<compile_context>
chip_gen: v6e
topology: v6e:2x2x1
jax: 0.10.0
libtpu: 0.0.40
codegen_flags: <defaults>
</compile_context>

<pallas_src>
import numpy as np

import jax
import jax.numpy as jnp
from jax import lax
from jax.experimental import pallas as pl
from jax.experimental.pallas import tpu as pltpu

COMPUTE_DTYPE = jnp.bfloat16   # MXU operand dtype; accumulation is always f32
VMEM_LIMIT = 32 * 1024 * 1024  # safe on v5e/v6e (128 MiB) and v7x (64 MiB)


def _round_up(x, m):
    return ((x + m - 1) // m) * m


# ---------------------------------------------------------------------------
# Init-time weight transforms (done once, NOT per forward pass)
# ---------------------------------------------------------------------------
def _conv_tables(w, b, w_in, dtype):
    """Structured conv RHS: R[i, w*Cin+ci, wo*Cout+co] = w[co, ci, i, w-wo]
    (zero where w-wo is outside [0, KW)), plus the lane-tiled bias row."""
    w = np.asarray(w, np.float32)
    b = np.asarray(b, np.float32)
    cout, cin, kh, kw = w.shape
    wo_n = w_in - kw + 1
    R = np.zeros((kh, w_in * cin, wo_n * cout), np.float32)
    for i in range(kh):
        for j in range(kw):
            wt = w[:, :, i, j].T                       # (Cin, Cout)
            for wo in range(wo_n):
                R[i, (wo + j) * cin:(wo + j + 1) * cin,
                  wo * cout:(wo + 1) * cout] = wt
    bias_row = np.tile(b[None, :], (1, wo_n))          # (1, Wo*Cout), [0, wo*Cout+co]=b[co]
    return jnp.asarray(R, dtype), jnp.asarray(bias_row, jnp.float32)


def _wpool_selectors(wo_n, cout, dtype):
    """0/1 column selectors: y @ Se picks the even-wo columns, y @ So the odd ones."""
    wo2 = wo_n // 2
    se = np.zeros((wo_n * cout, wo2 * cout), np.float32)
    so = np.zeros_like(se)
    for w2 in range(wo2):
        for c in range(cout):
            se[(2 * w2) * cout + c, w2 * cout + c] = 1.0
            so[(2 * w2 + 1) * cout + c, w2 * cout + c] = 1.0
    return jnp.asarray(se, dtype), jnp.asarray(so, dtype)


def _hpool_selectors(b_tile, h, kh, dtype):
    """0/1 row selectors over the stacked conv rows: Te @ acc picks row
    (b*H + 2*h2) of image b, To the (b*H + 2*h2 + 1) row.  They also discard
    the invalid rows that straddle image boundaries inside the batch stack."""
    ho = h - kh + 1
    ho2 = ho // 2
    m_acc = b_tile * h - kh + 1
    te = np.zeros((b_tile * ho2, m_acc), np.float32)
    to = np.zeros_like(te)
    for b in range(b_tile):
        for h2 in range(ho2):
            te[b * ho2 + h2, b * h + 2 * h2] = 1.0
            to[b * ho2 + h2, b * h + 2 * h2 + 1] = 1.0
    return jnp.asarray(te, dtype), jnp.asarray(to, dtype)


def init_params(key):
    """Random parameters in PyTorch layout (Conv2d: (O,I,kh,kw), Linear: (out,in))."""
    ks = jax.random.split(key, 10)
    s = 0.05
    return {
        "conv1_w": jax.random.normal(ks[0], (6, 3, 5, 5), jnp.float32) * s,
        "conv1_b": jax.random.normal(ks[1], (6,), jnp.float32) * s,
        "conv2_w": jax.random.normal(ks[2], (16, 6, 5, 5), jnp.float32) * s,
        "conv2_b": jax.random.normal(ks[3], (16,), jnp.float32) * s,
        "fc1_w": jax.random.normal(ks[4], (120, 16 * 5 * 5), jnp.float32) * s,
        "fc1_b": jax.random.normal(ks[5], (120,), jnp.float32) * s,
        "fc2_w": jax.random.normal(ks[6], (84, 120), jnp.float32) * s,
        "fc2_b": jax.random.normal(ks[7], (84,), jnp.float32) * s,
        "fc3_w": jax.random.normal(ks[8], (2, 84), jnp.float32) * s,
        "fc3_b": jax.random.normal(ks[9], (2,), jnp.float32) * s,
    }


def prepare_params(p, dtype=COMPUTE_DTYPE):
    """One-time conversion of PyTorch-layout weights into kernel-ready tables."""
    kp = {}
    kp["conv1_R"], kp["conv1_bt"] = _conv_tables(p["conv1_w"], p["conv1_b"], 32, dtype)
    kp["conv2_R"], kp["conv2_bt"] = _conv_tables(p["conv2_w"], p["conv2_b"], 14, dtype)
    # PyTorch flattens NCHW as (c, h, w); our conv features flatten as (h, w, c),
    # so permute fc1's weight rows once here instead of transposing activations.
    w1 = np.asarray(p["fc1_w"], np.float32)            # (120, 400), in-index = c*25+h*5+w
    w1 = w1.reshape(120, 16, 5, 5).transpose(2, 3, 1, 0).reshape(400, 120)
    kp["fc1_w"] = jnp.asarray(w1, dtype)
    kp["fc1_b"] = jnp.asarray(np.asarray(p["fc1_b"], np.float32)[None, :])
    kp["fc2_w"] = jnp.asarray(np.asarray(p["fc2_w"], np.float32).T, dtype)
    kp["fc2_b"] = jnp.asarray(np.asarray(p["fc2_b"], np.float32)[None, :])
    kp["fc3_w"] = jnp.asarray(np.asarray(p["fc3_w"], np.float32).T, dtype)
    kp["fc3_b"] = jnp.asarray(np.asarray(p["fc3_b"], np.float32)[None, :])
    return kp


# ---------------------------------------------------------------------------
# Pallas kernels
# ---------------------------------------------------------------------------
def _make_conv_kernel(kh, m_acc):
    """Direct conv (kh MXU dots against structured RHS) + bias + ReLU + 2x2 maxpool."""
    def kernel(x_ref, r_ref, b_ref, se_ref, so_ref, te_ref, to_ref, o_ref):
        acc = jnp.dot(x_ref[0, 0:m_acc, :], r_ref[0],
                      preferred_element_type=jnp.float32)
        for i in range(1, kh):
            acc = acc + jnp.dot(x_ref[0, i:i + m_acc, :], r_ref[i],
                                preferred_element_type=jnp.float32)
        # Bias + ReLU in f32, then drop to the compute dtype.  The pooling
        # matmuls below are exact 0/1 selections and max is monotone, so this
        # is identical to pooling in f32 and casting at the final store.
        y = jnp.maximum(acc + b_ref[...], 0.0).astype(se_ref.dtype)
        # W-direction pool: exact 0/1 column selection on the MXU (lane-dense).
        m = jnp.maximum(
            jnp.dot(y, se_ref[...], preferred_element_type=jnp.float32),
            jnp.dot(y, so_ref[...], preferred_element_type=jnp.float32),
        ).astype(te_ref.dtype)
        # H-direction pool (+ drop of invalid stacked-boundary rows).
        p = jnp.maximum(
            jnp.dot(te_ref[...], m, preferred_element_type=jnp.float32),
            jnp.dot(to_ref[...], m, preferred_element_type=jnp.float32))
        o_ref[0, :, :] = p.astype(o_ref.dtype)
    return kernel


def _fc_fused_kernel(x_ref, w1_ref, b1_ref, w2_ref, b2_ref, w3_ref, b3_ref, o_ref):
    h = jnp.dot(x_ref[...], w1_ref[...], preferred_element_type=jnp.float32)
    h = jnp.maximum(h + b1_ref[...], 0.0).astype(w2_ref.dtype)
    h = jnp.dot(h, w2_ref[...], preferred_element_type=jnp.float32)
    h = jnp.maximum(h + b2_ref[...], 0.0).astype(w3_ref.dtype)
    h = jnp.dot(h, w3_ref[...], preferred_element_type=jnp.float32) + b3_ref[...]
    o_ref[...] = h.astype(o_ref.dtype)


# ---------------------------------------------------------------------------
# Wrappers
# ---------------------------------------------------------------------------
def conv_relu_pool(x, R, bias_row, *, w_in, cin, cout, kh, kw, b_tile):
    """x: (NB, b_tile*H, W_in*Cin) stacked batch tiles, channels-last packed lanes.
    Returns (NB, b_tile*(Ho//2), (Wo//2)*Cout) in the same layout convention."""
    nb, mh, wc = x.shape
    assert wc == w_in * cin and mh % b_tile == 0
    h = mh // b_tile
    ho, wo_n = h - kh + 1, w_in - kw + 1
    ho2, wo2 = ho // 2, wo_n // 2
    m_acc = mh - kh + 1
    se, so = _wpool_selectors(wo_n, cout, x.dtype)
    te, to = _hpool_selectors(b_tile, h, kh, x.dtype)
    out_rows, out_cols = b_tile * ho2, wo2 * cout

    flops = 2 * nb * (kh * m_acc * wc * wo_n * cout
                      + 2 * m_acc * wo_n * cout * out_cols
                      + 2 * out_rows * m_acc * out_cols)
    bytes_accessed = (int(x.size) * x.dtype.itemsize
                      + int(R.size) * R.dtype.itemsize
                      + nb * out_rows * out_cols * x.dtype.itemsize
                      + (int(se.size) + int(so.size) + int(te.size)
                         + int(to.size)) * x.dtype.itemsize
                      + int(bias_row.size) * 4)

    return pl.pallas_call(
        _make_conv_kernel(kh, m_acc),
        grid=(nb,),
        in_specs=[
            pl.BlockSpec((1, mh, wc), lambda n: (n, 0, 0)),
            pl.BlockSpec(R.shape, lambda n: (0, 0, 0)),
            pl.BlockSpec(bias_row.shape, lambda n: (0, 0)),
            pl.BlockSpec(se.shape, lambda n: (0, 0)),
            pl.BlockSpec(so.shape, lambda n: (0, 0)),
            pl.BlockSpec(te.shape, lambda n: (0, 0)),
            pl.BlockSpec(to.shape, lambda n: (0, 0)),
        ],
        out_specs=pl.BlockSpec((1, out_rows, out_cols), lambda n: (n, 0, 0)),
        out_shape=jax.ShapeDtypeStruct((nb, out_rows, out_cols), x.dtype),
        compiler_params=pltpu.CompilerParams(
            dimension_semantics=("parallel",),
            vmem_limit_bytes=VMEM_LIMIT),
        cost_estimate=pl.CostEstimate(flops=flops, transcendentals=0,
                                      bytes_accessed=bytes_accessed),
    )(x, R, bias_row, se, so, te, to)


def fc_stack(feats, kp):
    """Fused fc1 -> relu -> fc2 -> relu -> fc3 in a single kernel, M-tiled."""
    n, k = feats.shape
    tm = n if n <= 256 else 256
    npad = _round_up(n, tm)
    if npad != n:
        feats = jnp.concatenate(
            [feats, jnp.zeros((npad - n, k), feats.dtype)], axis=0)
    w1, b1 = kp["fc1_w"], kp["fc1_b"]
    w2, b2 = kp["fc2_w"], kp["fc2_b"]
    w3, b3 = kp["fc3_w"], kp["fc3_b"]

    flops = 2 * npad * (k * w1.shape[1] + w1.shape[1] * w2.shape[1]
                        + w2.shape[1] * w3.shape[1])
    bytes_accessed = (int(feats.size) * feats.dtype.itemsize
                      + sum(int(a.size) * a.dtype.itemsize
                            for a in (w1, b1, w2, b2, w3, b3))
                      + npad * int(w3.shape[1]) * 4)

    out = pl.pallas_call(
        _fc_fused_kernel,
        grid=(npad // tm,),
        in_specs=[
            pl.BlockSpec((tm, k), lambda m: (m, 0)),
            pl.BlockSpec(w1.shape, lambda m: (0, 0)),
            pl.BlockSpec(b1.shape, lambda m: (0, 0)),
            pl.BlockSpec(w2.shape, lambda m: (0, 0)),
            pl.BlockSpec(b2.shape, lambda m: (0, 0)),
            pl.BlockSpec(w3.shape, lambda m: (0, 0)),
            pl.BlockSpec(b3.shape, lambda m: (0, 0)),
        ],
        out_specs=pl.BlockSpec((tm, w3.shape[1]), lambda m: (m, 0)),
        out_shape=jax.ShapeDtypeStruct((npad, w3.shape[1]), jnp.float32),
        compiler_params=pltpu.CompilerParams(
            dimension_semantics=("parallel",),
            vmem_limit_bytes=VMEM_LIMIT),
        cost_estimate=pl.CostEstimate(flops=flops, transcendentals=0,
                                      bytes_accessed=bytes_accessed),
    )(feats, w1, b1, w2, b2, w3, b3)
    return out[:n]


# ---------------------------------------------------------------------------
# Net forward
# ---------------------------------------------------------------------------
def net_forward(kp, x):
    # x: (N, 3, 32, 32) float32 NCHW (PyTorch layout); spatial size fixed by 16*5*5.
    n = x.shape[0]
    b_tile = min(8, n)
    npad = _round_up(n, b_tile)
    # One-time layout conversion: NCHW -> (N, H, W*Cin), channels-last packed lanes.
    x = jnp.transpose(x, (0, 2, 3, 1)).reshape(n, 32, 32 * 3).astype(COMPUTE_DTYPE)
    if npad != n:
        x = jnp.concatenate(
            [x, jnp.zeros((npad - n, 32, 32 * 3), x.dtype)], axis=0)
    x = x.reshape(npad // b_tile, b_tile * 32, 32 * 3)   # stacked batch tiles

    h = conv_relu_pool(x, kp["conv1_R"], kp["conv1_bt"],
                       w_in=32, cin=3, cout=6, kh=5, kw=5, b_tile=b_tile)
    # -> (npad/b, b*14, 14*6)
    h = conv_relu_pool(h, kp["conv2_R"], kp["conv2_bt"],
                       w_in=14, cin=6, cout=16, kh=5, kw=5, b_tile=b_tile)
    # -> (npad/b, b*5, 5*16)
    feats = h.reshape(npad, 16 * 5 * 5)                  # per-image (h, w, c) flatten
    logits = fc_stack(feats, kp)                         # (npad, 2) f32
    return logits[:n]


# ---------------------------------------------------------------------------
# Pure-JAX reference (PyTorch semantics) for correctness validation
# ---------------------------------------------------------------------------
def reference_forward(p, x):
    def conv(x, w, b):
        y = lax.conv_general_dilated(x, w, window_strides=(1, 1), padding="VALID",
                                     dimension_numbers=("NCHW", "OIHW", "NCHW"))
        return y + b[None, :, None, None]

    def pool(x):
        return lax.reduce_window(x, -jnp.inf, lax.max,
                                 window_dimensions=(1, 1, 2, 2),
                                 window_strides=(1, 1, 2, 2), padding="VALID")

    h = pool(jax.nn.relu(conv(x, p["conv1_w"], p["conv1_b"])))
    h = pool(jax.nn.relu(conv(h, p["conv2_w"], p["conv2_b"])))
    h = h.reshape(h.shape[0], -1)                         # NCHW flatten (c,h,w)
    h = jax.nn.relu(h @ p["fc1_w"].T + p["fc1_b"])
    h = jax.nn.relu(h @ p["fc2_w"].T + p["fc2_b"])
    return h @ p["fc3_w"].T + p["fc3_b"]


if __name__ == "__main__":
    key = jax.random.PRNGKey(0)
    pkey, xkey = jax.random.split(key)
    torch_params = init_params(pkey)            # PyTorch-layout params
    kparams = prepare_params(torch_params)      # one-time kernel-layout transform
    x = jax.random.normal(xkey, (2, 3, 32, 32), jnp.float32)

    fwd = jax.jit(net_forward)
    out = jax.block_until_ready(fwd(kparams, x))
    assert out.shape == (2, 2), out.shape

    # Validate against a pure-JAX f32 reference (tolerance covers bf16 MXU operands).
    ref = jax.block_until_ready(reference_forward(torch_params, x))
    np.testing.assert_allclose(np.asarray(out), np.asarray(ref),
                               rtol=2e-1, atol=2e-2)
    print("KERNEL_OK")
</pallas_src>

<mosaic_0001>
module attributes {stable_mosaic.version = 11 : i64} {
  func.func @kernel(%arg0: i32, %arg1: memref<1x64x96xbf16, #tpu.memory_space<vmem>>, %arg2: memref<5x96x168xbf16, #tpu.memory_space<vmem>>, %arg3: memref<1x168xf32, #tpu.memory_space<vmem>>, %arg4: memref<168x84xbf16, #tpu.memory_space<vmem>>, %arg5: memref<168x84xbf16, #tpu.memory_space<vmem>>, %arg6: memref<28x60xbf16, #tpu.memory_space<vmem>>, %arg7: memref<28x60xbf16, #tpu.memory_space<vmem>>, %arg8: memref<1x28x84xbf16, #tpu.memory_space<vmem>>) attributes {dimension_semantics = [#tpu.dimension_semantics<parallel>], iteration_bounds = array<i64: 1>, scalar_prefetch = 0 : i64, scratch_operands = 0 : i64, tpu.core_type = #tpu.core_type<tc>, window_params = [{transform_indices = @transform_0, window_bounds = array<i64: 1, 64, 96>}, {pipeline_mode = #tpu.pipeline_mode<synchronous>, transform_indices = @transform_1, window_bounds = array<i64: 5, 96, 168>}, {pipeline_mode = #tpu.pipeline_mode<synchronous>, transform_indices = @transform_2, window_bounds = array<i64: 1, 168>}, {pipeline_mode = #tpu.pipeline_mode<synchronous>, transform_indices = @transform_3, window_bounds = array<i64: 168, 84>}, {pipeline_mode = #tpu.pipeline_mode<synchronous>, transform_indices = @transform_4, window_bounds = array<i64: 168, 84>}, {pipeline_mode = #tpu.pipeline_mode<synchronous>, transform_indices = @transform_5, window_bounds = array<i64: 28, 60>}, {pipeline_mode = #tpu.pipeline_mode<synchronous>, transform_indices = @transform_6, window_bounds = array<i64: 28, 60>}, {transform_indices = @transform_7, window_bounds = array<i64: 1, 28, 84>}]} {
    %c0 = arith.constant 0 : index
    %c0_0 = arith.constant 0 : index
    %c0_1 = arith.constant 0 : index
    %0 = vector.load %arg1[%c0, %c0_0, %c0_1] : memref<1x64x96xbf16, #tpu.memory_space<vmem>>, vector<1x60x96xbf16>
    %1 = vector.shape_cast %0 : vector<1x60x96xbf16> to vector<60x96xbf16>
    %c0_2 = arith.constant 0 : index
    %c0_3 = arith.constant 0 : index
    %c0_4 = arith.constant 0 : index
    %2 = vector.load %arg2[%c0_2, %c0_3, %c0_4] : memref<5x96x168xbf16, #tpu.memory_space<vmem>>, vector<1x96x168xbf16>
    %3 = vector.shape_cast %2 : vector<1x96x168xbf16> to vector<96x168xbf16>
    %cst = arith.constant dense<0.000000e+00> : vector<60x168xf32>
    %4 = tpu.matmul %1, %3, %cst {dimension_numbers = #tpu.dot_dimension_numbers<[1], [0], [0], [1], [0, 0, 1, 1], [], []>} : vector<60x96xbf16>, vector<96x168xbf16>, vector<60x168xf32> -> vector<60x168xf32>
    %c0_5 = arith.constant 0 : index
    %c1 = arith.constant 1 : index
    %c0_6 = arith.constant 0 : index
    %5 = vector.load %arg1[%c0_5, %c1, %c0_6] : memref<1x64x96xbf16, #tpu.memory_space<vmem>>, vector<1x60x96xbf16>
    %6 = vector.shape_cast %5 : vector<1x60x96xbf16> to vector<60x96xbf16>
    %c1_7 = arith.constant 1 : index
    %c0_8 = arith.constant 0 : index
    %c0_9 = arith.constant 0 : index
    %7 = vector.load %arg2[%c1_7, %c0_8, %c0_9] : memref<5x96x168xbf16, #tpu.memory_space<vmem>>, vector<1x96x168xbf16>
    %8 = vector.shape_cast %7 : vector<1x96x168xbf16> to vector<96x168xbf16>
    %cst_10 = arith.constant dense<0.000000e+00> : vector<60x168xf32>
    %9 = tpu.matmul %6, %8, %cst_10 {dimension_numbers = #tpu.dot_dimension_numbers<[1], [0], [0], [1], [0, 0, 1, 1], [], []>} : vector<60x96xbf16>, vector<96x168xbf16>, vector<60x168xf32> -> vector<60x168xf32>
    %10 = arith.addf %4, %9 : vector<60x168xf32>
    %c0_11 = arith.constant 0 : index
    %c2 = arith.constant 2 : index
    %c0_12 = arith.constant 0 : index
    %11 = vector.load %arg1[%c0_11, %c2, %c0_12] : memref<1x64x96xbf16, #tpu.memory_space<vmem>>, vector<1x60x96xbf16>
    %12 = vector.shape_cast %11 : vector<1x60x96xbf16> to vector<60x96xbf16>
    %c2_13 = arith.constant 2 : index
    %c0_14 = arith.constant 0 : index
    %c0_15 = arith.constant 0 : index
    %13 = vector.load %arg2[%c2_13, %c0_14, %c0_15] : memref<5x96x168xbf16, #tpu.memory_space<vmem>>, vector<1x96x168xbf16>
    %14 = vector.shape_cast %13 : vector<1x96x168xbf16> to vector<96x168xbf16>
    %cst_16 = arith.constant dense<0.000000e+00> : vector<60x168xf32>
    %15 = tpu.matmul %12, %14, %cst_16 {dimension_numbers = #tpu.dot_dimension_numbers<[1], [0], [0], [1], [0, 0, 1, 1], [], []>} : vector<60x96xbf16>, vector<96x168xbf16>, vector<60x168xf32> -> vector<60x168xf32>
    %16 = arith.addf %10, %15 : vector<60x168xf32>
    %c0_17 = arith.constant 0 : index
    %c3 = arith.constant 3 : index
    %c0_18 = arith.constant 0 : index
    %17 = vector.load %arg1[%c0_17, %c3, %c0_18] : memref<1x64x96xbf16, #tpu.memory_space<vmem>>, vector<1x60x96xbf16>
    %18 = vector.shape_cast %17 : vector<1x60x96xbf16> to vector<60x96xbf16>
    %c3_19 = arith.constant 3 : index
    %c0_20 = arith.constant 0 : index
    %c0_21 = arith.constant 0 : index
    %19 = vector.load %arg2[%c3_19, %c0_20, %c0_21] : memref<5x96x168xbf16, #tpu.memory_space<vmem>>, vector<1x96x168xbf16>
    %20 = vector.shape_cast %19 : vector<1x96x168xbf16> to vector<96x168xbf16>
    %cst_22 = arith.constant dense<0.000000e+00> : vector<60x168xf32>
    %21 = tpu.matmul %18, %20, %cst_22 {dimension_numbers = #tpu.dot_dimension_numbers<[1], [0], [0], [1], [0, 0, 1, 1], [], []>} : vector<60x96xbf16>, vector<96x168xbf16>, vector<60x168xf32> -> vector<60x168xf32>
    %22 = arith.addf %16, %21 : vector<60x168xf32>
    %c0_23 = arith.constant 0 : index
    %c4 = arith.constant 4 : index
    %c0_24 = arith.constant 0 : index
    %23 = vector.load %arg1[%c0_23, %c4, %c0_24] : memref<1x64x96xbf16, #tpu.memory_space<vmem>>, vector<1x60x96xbf16>
    %24 = vector.shape_cast %23 : vector<1x60x96xbf16> to vector<60x96xbf16>
    %c4_25 = arith.constant 4 : index
    %c0_26 = arith.constant 0 : index
    %c0_27 = arith.constant 0 : index
    %25 = vector.load %arg2[%c4_25, %c0_26, %c0_27] : memref<5x96x168xbf16, #tpu.memory_space<vmem>>, vector<1x96x168xbf16>
    %26 = vector.shape_cast %25 : vector<1x96x168xbf16> to vector<96x168xbf16>
    %cst_28 = arith.constant dense<0.000000e+00> : vector<60x168xf32>
    %27 = tpu.matmul %24, %26, %cst_28 {dimension_numbers = #tpu.dot_dimension_numbers<[1], [0], [0], [1], [0, 0, 1, 1], [], []>} : vector<60x96xbf16>, vector<96x168xbf16>, vector<60x168xf32> -> vector<60x168xf32>
    %28 = arith.addf %22, %27 : vector<60x168xf32>
    %c0_29 = arith.constant 0 : index
    %c0_30 = arith.constant 0 : index
    %29 = vector.load %arg3[%c0_29, %c0_30] : memref<1x168xf32, #tpu.memory_space<vmem>>, vector<1x168xf32>
    %30 = vector.broadcast %29 : vector<1x168xf32> to vector<60x168xf32>
    %31 = arith.addf %28, %30 : vector<60x168xf32>
    %cst_31 = arith.constant 0.000000e+00 : f32
    %32 = vector.broadcast %cst_31 : f32 to vector<60x168xf32>
    %33 = arith.maximumf %31, %32 : vector<60x168xf32>
    %34 = arith.truncf %33 : vector<60x168xf32> to vector<60x168xbf16>
    %c0_32 = arith.constant 0 : index
    %c0_33 = arith.constant 0 : index
    %35 = vector.load %arg4[%c0_32, %c0_33] : memref<168x84xbf16, #tpu.memory_space<vmem>>, vector<168x84xbf16>
    %cst_34 = arith.constant dense<0.000000e+00> : vector<60x84xf32>
    %36 = tpu.matmul %34, %35, %cst_34 {dimension_numbers = #tpu.dot_dimension_numbers<[1], [0], [0], [1], [0, 0, 1, 1], [], []>} : vector<60x168xbf16>, vector<168x84xbf16>, vector<60x84xf32> -> vector<60x84xf32>
    %c0_35 = arith.constant 0 : index
    %c0_36 = arith.constant 0 : index
    %37 = vector.load %arg5[%c0_35, %c0_36] : memref<168x84xbf16, #tpu.memory_space<vmem>>, vector<168x84xbf16>
    %cst_37 = arith.constant dense<0.000000e+00> : vector<60x84xf32>
    %38 = tpu.matmul %34, %37, %cst_37 {dimension_numbers = #tpu.dot_dimension_numbers<[1], [0], [0], [1], [0, 0, 1, 1], [], []>} : vector<60x168xbf16>, vector<168x84xbf16>, vector<60x84xf32> -> vector<60x84xf32>
    %39 = arith.maximumf %36, %38 : vector<60x84xf32>
    %40 = arith.truncf %39 : vector<60x84xf32> to vector<60x84xbf16>
    %c0_38 = arith.constant 0 : index
    %c0_39 = arith.constant 0 : index
    %41 = vector.load %arg6[%c0_38, %c0_39] : memref<28x60xbf16, #tpu.memory_space<vmem>>, vector<28x60xbf16>
    %cst_40 = arith.constant dense<0.000000e+00> : vector<28x84xf32>
    %42 = tpu.matmul %41, %40, %cst_40 {dimension_numbers = #tpu.dot_dimension_numbers<[1], [0], [0], [1], [0, 0, 1, 1], [], []>} : vector<28x60xbf16>, vector<60x84xbf16>, vector<28x84xf32> -> vector<28x84xf32>
    %c0_41 = arith.constant 0 : index
    %c0_42 = arith.constant 0 : index
    %43 = vector.load %arg7[%c0_41, %c0_42] : memref<28x60xbf16, #tpu.memory_space<vmem>>, vector<28x60xbf16>
    %cst_43 = arith.constant dense<0.000000e+00> : vector<28x84xf32>
    %44 = tpu.matmul %43, %40, %cst_43 {dimension_numbers = #tpu.dot_dimension_numbers<[1], [0], [0], [1], [0, 0, 1, 1], [], []>} : vector<28x60xbf16>, vector<60x84xbf16>, vector<28x84xf32> -> vector<28x84xf32>
    %45 = arith.maximumf %42, %44 : vector<28x84xf32>
    %46 = arith.truncf %45 : vector<28x84xf32> to vector<28x84xbf16>
    %c0_44 = arith.constant 0 : index
    %c0_45 = arith.constant 0 : index
    %c0_46 = arith.constant 0 : index
    %47 = vector.load %arg8[%c0_44, %c0_45, %c0_46] : memref<1x28x84xbf16, #tpu.memory_space<vmem>>, vector<1x28x84xbf16>
    %48 = vector.shape_cast %47 : vector<1x28x84xbf16> to vector<28x84xbf16>
    %49 = vector.shape_cast %46 : vector<28x84xbf16> to vector<1x28x84xbf16>
    tpu.vector_store %arg8[%c0_44, %c0_45, %c0_46], %49 {strides = array<i32>} : memref<1x28x84xbf16, #tpu.memory_space<vmem>>, vector<1x28x84xbf16>,
    return
  }
  func.func @transform_0(%arg0: i32) -> (i32, i32, i32) {
    %c0_i32 = arith.constant 0 : i32
    %c0_i32_0 = arith.constant 0 : i32
    %c0_i32_1 = arith.constant 0 : i32
    return %arg0, %c0_i32, %c0_i32_0 : i32, i32, i32
  }
  func.func @transform_1(%arg0: i32) -> (i32, i32, i32) {
    %c0_i32 = arith.constant 0 : i32
    %c0_i32_0 = arith.constant 0 : i32
    %c0_i32_1 = arith.constant 0 : i32
    %c0_i32_2 = arith.constant 0 : i32
    return %c0_i32, %c0_i32_0, %c0_i32_1 : i32, i32, i32
  }
  func.func @transform_2(%arg0: i32) -> (i32, i32) {
    %c0_i32 = arith.constant 0 : i32
    %c0_i32_0 = arith.constant 0 : i32
    %c0_i32_1 = arith.constant 0 : i32
    return %c0_i32, %c0_i32_0 : i32, i32
  }
  func.func @transform_3(%arg0: i32) -> (i32, i32) {
    %c0_i32 = arith.constant 0 : i32
    %c0_i32_0 = arith.constant 0 : i32
    %c0_i32_1 = arith.constant 0 : i32
    return %c0_i32, %c0_i32_0 : i32, i32
  }
  func.func @transform_4(%arg0: i32) -> (i32, i32) {
    %c0_i32 = arith.constant 0 : i32
    %c0_i32_0 = arith.constant 0 : i32
    %c0_i32_1 = arith.constant 0 : i32
    return %c0_i32, %c0_i32_0 : i32, i32
  }
  func.func @transform_5(%arg0: i32) -> (i32, i32) {
    %c0_i32 = arith.constant 0 : i32
    %c0_i32_0 = arith.constant 0 : i32
    %c0_i32_1 = arith.constant 0 : i32
    return %c0_i32, %c0_i32_0 : i32, i32
  }
  func.func @transform_6(%arg0: i32) -> (i32, i32) {
    %c0_i32 = arith.constant 0 : i32
    %c0_i32_0 = arith.constant 0 : i32
    %c0_i32_1 = arith.constant 0 : i32
    return %c0_i32, %c0_i32_0 : i32, i32
  }
  func.func @transform_7(%arg0: i32) -> (i32, i32, i32) {
    %c0_i32 = arith.constant 0 : i32
    %c0_i32_0 = arith.constant 0 : i32
    %c0_i32_1 = arith.constant 0 : i32
    return %arg0, %c0_i32, %c0_i32_0 : i32, i32, i32
  }
}

module attributes {stable_mosaic.version = 11 : i64} {
  func.func @kernel(%arg0: i32, %arg1: memref<1x28x84xbf16, #tpu.memory_space<vmem>>, %arg2: memref<5x84x160xbf16, #tpu.memory_space<vmem>>, %arg3: memref<1x160xf32, #tpu.memory_space<vmem>>, %arg4: memref<160x80xbf16, #tpu.memory_space<vmem>>, %arg5: memref<160x80xbf16, #tpu.memory_space<vmem>>, %arg6: memref<10x24xbf16, #tpu.memory_space<vmem>>, %arg7: memref<10x24xbf16, #tpu.memory_space<vmem>>, %arg8: memref<1x10x80xbf16, #tpu.memory_space<vmem>>) attributes {dimension_semantics = [#tpu.dimension_semantics<parallel>], iteration_bounds = array<i64: 1>, scalar_prefetch = 0 : i64, scratch_operands = 0 : i64, tpu.core_type = #tpu.core_type<tc>, window_params = [{transform_indices = @transform_0, window_bounds = array<i64: 1, 28, 84>}, {pipeline_mode = #tpu.pipeline_mode<synchronous>, transform_indices = @transform_1, window_bounds = array<i64: 5, 84, 160>}, {pipeline_mode = #tpu.pipeline_mode<synchronous>, transform_indices = @transform_2, window_bounds = array<i64: 1, 160>}, {pipeline_mode = #tpu.pipeline_mode<synchronous>, transform_indices = @transform_3, window_bounds = array<i64: 160, 80>}, {pipeline_mode = #tpu.pipeline_mode<synchronous>, transform_indices = @transform_4, window_bounds = array<i64: 160, 80>}, {pipeline_mode = #tpu.pipeline_mode<synchronous>, transform_indices = @transform_5, window_bounds = array<i64: 10, 24>}, {pipeline_mode = #tpu.pipeline_mode<synchronous>, transform_indices = @transform_6, window_bounds = array<i64: 10, 24>}, {transform_indices = @transform_7, window_bounds = array<i64: 1, 10, 80>}]} {
    %c0 = arith.constant 0 : index
    %c0_0 = arith.constant 0 : index
    %c0_1 = arith.constant 0 : index
    %0 = vector.load %arg1[%c0, %c0_0, %c0_1] : memref<1x28x84xbf16, #tpu.memory_space<vmem>>, vector<1x24x84xbf16>
    %1 = vector.shape_cast %0 : vector<1x24x84xbf16> to vector<24x84xbf16>
    %c0_2 = arith.constant 0 : index
    %c0_3 = arith.constant 0 : index
    %c0_4 = arith.constant 0 : index
    %2 = vector.load %arg2[%c0_2, %c0_3, %c0_4] : memref<5x84x160xbf16, #tpu.memory_space<vmem>>, vector<1x84x160xbf16>
    %3 = vector.shape_cast %2 : vector<1x84x160xbf16> to vector<84x160xbf16>
    %cst = arith.constant dense<0.000000e+00> : vector<24x160xf32>
    %4 = tpu.matmul %1, %3, %cst {dimension_numbers = #tpu.dot_dimension_numbers<[1], [0], [0], [1], [0, 0, 1, 1], [], []>} : vector<24x84xbf16>, vector<84x160xbf16>, vector<24x160xf32> -> vector<24x160xf32>
    %c0_5 = arith.constant 0 : index
    %c1 = arith.constant 1 : index
    %c0_6 = arith.constant 0 : index
    %5 = vector.load %arg1[%c0_5, %c1, %c0_6] : memref<1x28x84xbf16, #tpu.memory_space<vmem>>, vector<1x24x84xbf16>
    %6 = vector.shape_cast %5 : vector<1x24x84xbf16> to vector<24x84xbf16>
    %c1_7 = arith.constant 1 : index
    %c0_8 = arith.constant 0 : index
    %c0_9 = arith.constant 0 : index
    %7 = vector.load %arg2[%c1_7, %c0_8, %c0_9] : memref<5x84x160xbf16, #tpu.memory_space<vmem>>, vector<1x84x160xbf16>
    %8 = vector.shape_cast %7 : vector<1x84x160xbf16> to vector<84x160xbf16>
    %cst_10 = arith.constant dense<0.000000e+00> : vector<24x160xf32>
    %9 = tpu.matmul %6, %8, %cst_10 {dimension_numbers = #tpu.dot_dimension_numbers<[1], [0], [0], [1], [0, 0, 1, 1], [], []>} : vector<24x84xbf16>, vector<84x160xbf16>, vector<24x160xf32> -> vector<24x160xf32>
    %10 = arith.addf %4, %9 : vector<24x160xf32>
    %c0_11 = arith.constant 0 : index
    %c2 = arith.constant 2 : index
    %c0_12 = arith.constant 0 : index
    %11 = vector.load %arg1[%c0_11, %c2, %c0_12] : memref<1x28x84xbf16, #tpu.memory_space<vmem>>, vector<1x24x84xbf16>
    %12 = vector.shape_cast %11 : vector<1x24x84xbf16> to vector<24x84xbf16>
    %c2_13 = arith.constant 2 : index
    %c0_14 = arith.constant 0 : index
    %c0_15 = arith.constant 0 : index
    %13 = vector.load %arg2[%c2_13, %c0_14, %c0_15] : memref<5x84x160xbf16, #tpu.memory_space<vmem>>, vector<1x84x160xbf16>
    %14 = vector.shape_cast %13 : vector<1x84x160xbf16> to vector<84x160xbf16>
    %cst_16 = arith.constant dense<0.000000e+00> : vector<24x160xf32>
    %15 = tpu.matmul %12, %14, %cst_16 {dimension_numbers = #tpu.dot_dimension_numbers<[1], [0], [0], [1], [0, 0, 1, 1], [], []>} : vector<24x84xbf16>, vector<84x160xbf16>, vector<24x160xf32> -> vector<24x160xf32>
    %16 = arith.addf %10, %15 : vector<24x160xf32>
    %c0_17 = arith.constant 0 : index
    %c3 = arith.constant 3 : index
    %c0_18 = arith.constant 0 : index
    %17 = vector.load %arg1[%c0_17, %c3, %c0_18] : memref<1x28x84xbf16, #tpu.memory_space<vmem>>, vector<1x24x84xbf16>
    %18 = vector.shape_cast %17 : vector<1x24x84xbf16> to vector<24x84xbf16>
    %c3_19 = arith.constant 3 : index
    %c0_20 = arith.constant 0 : index
    %c0_21 = arith.constant 0 : index
    %19 = vector.load %arg2[%c3_19, %c0_20, %c0_21] : memref<5x84x160xbf16, #tpu.memory_space<vmem>>, vector<1x84x160xbf16>
    %20 = vector.shape_cast %19 : vector<1x84x160xbf16> to vector<84x160xbf16>
    %cst_22 = arith.constant dense<0.000000e+00> : vector<24x160xf32>
    %21 = tpu.matmul %18, %20, %cst_22 {dimension_numbers = #tpu.dot_dimension_numbers<[1], [0], [0], [1], [0, 0, 1, 1], [], []>} : vector<24x84xbf16>, vector<84x160xbf16>, vector<24x160xf32> -> vector<24x160xf32>
    %22 = arith.addf %16, %21 : vector<24x160xf32>
    %c0_23 = arith.constant 0 : index
    %c4 = arith.constant 4 : index
    %c0_24 = arith.constant 0 : index
    %23 = vector.load %arg1[%c0_23, %c4, %c0_24] : memref<1x28x84xbf16, #tpu.memory_space<vmem>>, vector<1x24x84xbf16>
    %24 = vector.shape_cast %23 : vector<1x24x84xbf16> to vector<24x84xbf16>
    %c4_25 = arith.constant 4 : index
    %c0_26 = arith.constant 0 : index
    %c0_27 = arith.constant 0 : index
    %25 = vector.load %arg2[%c4_25, %c0_26, %c0_27] : memref<5x84x160xbf16, #tpu.memory_space<vmem>>, vector<1x84x160xbf16>
    %26 = vector.shape_cast %25 : vector<1x84x160xbf16> to vector<84x160xbf16>
    %cst_28 = arith.constant dense<0.000000e+00> : vector<24x160xf32>
    %27 = tpu.matmul %24, %26, %cst_28 {dimension_numbers = #tpu.dot_dimension_numbers<[1], [0], [0], [1], [0, 0, 1, 1], [], []>} : vector<24x84xbf16>, vector<84x160xbf16>, vector<24x160xf32> -> vector<24x160xf32>
    %28 = arith.addf %22, %27 : vector<24x160xf32>
    %c0_29 = arith.constant 0 : index
    %c0_30 = arith.constant 0 : index
    %29 = vector.load %arg3[%c0_29, %c0_30] : memref<1x160xf32, #tpu.memory_space<vmem>>, vector<1x160xf32>
    %30 = vector.broadcast %29 : vector<1x160xf32> to vector<24x160xf32>
    %31 = arith.addf %28, %30 : vector<24x160xf32>
    %cst_31 = arith.constant 0.000000e+00 : f32
    %32 = vector.broadcast %cst_31 : f32 to vector<24x160xf32>
    %33 = arith.maximumf %31, %32 : vector<24x160xf32>
    %34 = arith.truncf %33 : vector<24x160xf32> to vector<24x160xbf16>
    %c0_32 = arith.constant 0 : index
    %c0_33 = arith.constant 0 : index
    %35 = vector.load %arg4[%c0_32, %c0_33] : memref<160x80xbf16, #tpu.memory_space<vmem>>, vector<160x80xbf16>
    %cst_34 = arith.constant dense<0.000000e+00> : vector<24x80xf32>
    %36 = tpu.matmul %34, %35, %cst_34 {dimension_numbers = #tpu.dot_dimension_numbers<[1], [0], [0], [1], [0, 0, 1, 1], [], []>} : vector<24x160xbf16>, vector<160x80xbf16>, vector<24x80xf32> -> vector<24x80xf32>
    %c0_35 = arith.constant 0 : index
    %c0_36 = arith.constant 0 : index
    %37 = vector.load %arg5[%c0_35, %c0_36] : memref<160x80xbf16, #tpu.memory_space<vmem>>, vector<160x80xbf16>
    %cst_37 = arith.constant dense<0.000000e+00> : vector<24x80xf32>
    %38 = tpu.matmul %34, %37, %cst_37 {dimension_numbers = #tpu.dot_dimension_numbers<[1], [0], [0], [1], [0, 0, 1, 1], [], []>} : vector<24x160xbf16>, vector<160x80xbf16>, vector<24x80xf32> -> vector<24x80xf32>
    %39 = arith.maximumf %36, %38 : vector<24x80xf32>
    %40 = arith.truncf %39 : vector<24x80xf32> to vector<24x80xbf16>
    %c0_38 = arith.constant 0 : index
    %c0_39 = arith.constant 0 : index
    %41 = vector.load %arg6[%c0_38, %c0_39] : memref<10x24xbf16, #tpu.memory_space<vmem>>, vector<10x24xbf16>
    %cst_40 = arith.constant dense<0.000000e+00> : vector<10x80xf32>
    %42 = tpu.matmul %41, %40, %cst_40 {dimension_numbers = #tpu.dot_dimension_numbers<[1], [0], [0], [1], [0, 0, 1, 1], [], []>} : vector<10x24xbf16>, vector<24x80xbf16>, vector<10x80xf32> -> vector<10x80xf32>
    %c0_41 = arith.constant 0 : index
    %c0_42 = arith.constant 0 : index
    %43 = vector.load %arg7[%c0_41, %c0_42] : memref<10x24xbf16, #tpu.memory_space<vmem>>, vector<10x24xbf16>
    %cst_43 = arith.constant dense<0.000000e+00> : vector<10x80xf32>
    %44 = tpu.matmul %43, %40, %cst_43 {dimension_numbers = #tpu.dot_dimension_numbers<[1], [0], [0], [1], [0, 0, 1, 1], [], []>} : vector<10x24xbf16>, vector<24x80xbf16>, vector<10x80xf32> -> vector<10x80xf32>
    %45 = arith.maximumf %42, %44 : vector<10x80xf32>
    %46 = arith.truncf %45 : vector<10x80xf32> to vector<10x80xbf16>
    %c0_44 = arith.constant 0 : index
    %c0_45 = arith.constant 0 : index
    %c0_46 = arith.constant 0 : index
    %47 = vector.load %arg8[%c0_44, %c0_45, %c0_46] : memref<1x10x80xbf16, #tpu.memory_space<vmem>>, vector<1x10x80xbf16>
    %48 = vector.shape_cast %47 : vector<1x10x80xbf16> to vector<10x80xbf16>
    %49 = vector.shape_cast %46 : vector<10x80xbf16> to vector<1x10x80xbf16>
    tpu.vector_store %arg8[%c0_44, %c0_45, %c0_46], %49 {strides = array<i32>} : memref<1x10x80xbf16, #tpu.memory_space<vmem>>, vector<1x10x80xbf16>,
    return
  }
  func.func @transform_0(%arg0: i32) -> (i32, i32, i32) {
    %c0_i32 = arith.constant 0 : i32
    %c0_i32_0 = arith.constant 0 : i32
    %c0_i32_1 = arith.constant 0 : i32
    return %arg0, %c0_i32, %c0_i32_0 : i32, i32, i32
  }
  func.func @transform_1(%arg0: i32) -> (i32, i32, i32) {
    %c0_i32 = arith.constant 0 : i32
    %c0_i32_0 = arith.constant 0 : i32
    %c0_i32_1 = arith.constant 0 : i32
    %c0_i32_2 = arith.constant 0 : i32
    return %c0_i32, %c0_i32_0, %c0_i32_1 : i32, i32, i32
  }
  func.func @transform_2(%arg0: i32) -> (i32, i32) {
    %c0_i32 = arith.constant 0 : i32
    %c0_i32_0 = arith.constant 0 : i32
    %c0_i32_1 = arith.constant 0 : i32
    return %c0_i32, %c0_i32_0 : i32, i32
  }
  func.func @transform_3(%arg0: i32) -> (i32, i32) {
    %c0_i32 = arith.constant 0 : i32
    %c0_i32_0 = arith.constant 0 : i32
    %c0_i32_1 = arith.constant 0 : i32
    return %c0_i32, %c0_i32_0 : i32, i32
  }
  func.func @transform_4(%arg0: i32) -> (i32, i32) {
    %c0_i32 = arith.constant 0 : i32
    %c0_i32_0 = arith.constant 0 : i32
    %c0_i32_1 = arith.constant 0 : i32
    return %c0_i32, %c0_i32_0 : i32, i32
  }
  func.func @transform_5(%arg0: i32) -> (i32, i32) {
    %c0_i32 = arith.constant 0 : i32
    %c0_i32_0 = arith.constant 0 : i32
    %c0_i32_1 = arith.constant 0 : i32
    return %c0_i32, %c0_i32_0 : i32, i32
  }
  func.func @transform_6(%arg0: i32) -> (i32, i32) {
    %c0_i32 = arith.constant 0 : i32
    %c0_i32_0 = arith.constant 0 : i32
    %c0_i32_1 = arith.constant 0 : i32
    return %c0_i32, %c0_i32_0 : i32, i32
  }
  func.func @transform_7(%arg0: i32) -> (i32, i32, i32) {
    %c0_i32 = arith.constant 0 : i32
    %c0_i32_0 = arith.constant 0 : i32
    %c0_i32_1 = arith.constant 0 : i32
    return %arg0, %c0_i32, %c0_i32_0 : i32, i32, i32
  }
}

module attributes {stable_mosaic.version = 11 : i64} {
  func.func @_fc_fused_kernel(%arg0: i32, %arg1: memref<2x400xbf16, #tpu.memory_space<vmem>>, %arg2: memref<400x120xbf16, #tpu.memory_space<vmem>>, %arg3: memref<1x120xf32, #tpu.memory_space<vmem>>, %arg4: memref<120x84xbf16, #tpu.memory_space<vmem>>, %arg5: memref<1x84xf32, #tpu.memory_space<vmem>>, %arg6: memref<84x2xbf16, #tpu.memory_space<vmem>>, %arg7: memref<1x2xf32, #tpu.memory_space<vmem>>, %arg8: memref<2x2xf32, #tpu.memory_space<vmem>>) attributes {dimension_semantics = [#tpu.dimension_semantics<parallel>], iteration_bounds = array<i64: 1>, scalar_prefetch = 0 : i64, scratch_operands = 0 : i64, tpu.core_type = #tpu.core_type<tc>, window_params = [{transform_indices = @transform_0, window_bounds = array<i64: 2, 400>}, {pipeline_mode = #tpu.pipeline_mode<synchronous>, transform_indices = @transform_1, window_bounds = array<i64: 400, 120>}, {pipeline_mode = #tpu.pipeline_mode<synchronous>, transform_indices = @transform_2, window_bounds = array<i64: 1, 120>}, {pipeline_mode = #tpu.pipeline_mode<synchronous>, transform_indices = @transform_3, window_bounds = array<i64: 120, 84>}, {pipeline_mode = #tpu.pipeline_mode<synchronous>, transform_indices = @transform_4, window_bounds = array<i64: 1, 84>}, {pipeline_mode = #tpu.pipeline_mode<synchronous>, transform_indices = @transform_5, window_bounds = array<i64: 84, 2>}, {pipeline_mode = #tpu.pipeline_mode<synchronous>, transform_indices = @transform_6, window_bounds = array<i64: 1, 2>}, {transform_indices = @transform_7, window_bounds = array<i64: 2, 2>}]} {
    %c0 = arith.constant 0 : index
    %c0_0 = arith.constant 0 : index
    %0 = vector.load %arg1[%c0, %c0_0] : memref<2x400xbf16, #tpu.memory_space<vmem>>, vector<2x400xbf16>
    %c0_1 = arith.constant 0 : index
    %c0_2 = arith.constant 0 : index
    %1 = vector.load %arg2[%c0_1, %c0_2] : memref<400x120xbf16, #tpu.memory_space<vmem>>, vector<400x120xbf16>
    %cst = arith.constant dense<0.000000e+00> : vector<2x120xf32>
    %2 = tpu.matmul %0, %1, %cst {dimension_numbers = #tpu.dot_dimension_numbers<[1], [0], [0], [1], [0, 0, 1, 1], [], []>} : vector<2x400xbf16>, vector<400x120xbf16>, vector<2x120xf32> -> vector<2x120xf32>
    %c0_3 = arith.constant 0 : index
    %c0_4 = arith.constant 0 : index
    %3 = vector.load %arg3[%c0_3, %c0_4] : memref<1x120xf32, #tpu.memory_space<vmem>>, vector<1x120xf32>
    %4 = vector.broadcast %3 : vector<1x120xf32> to vector<2x120xf32>
    %5 = arith.addf %2, %4 : vector<2x120xf32>
    %cst_5 = arith.constant 0.000000e+00 : f32
    %6 = vector.broadcast %cst_5 : f32 to vector<2x120xf32>
    %7 = arith.maximumf %5, %6 : vector<2x120xf32>
    %8 = arith.truncf %7 : vector<2x120xf32> to vector<2x120xbf16>
    %c0_6 = arith.constant 0 : index
    %c0_7 = arith.constant 0 : index
    %9 = vector.load %arg4[%c0_6, %c0_7] : memref<120x84xbf16, #tpu.memory_space<vmem>>, vector<120x84xbf16>
    %cst_8 = arith.constant dense<0.000000e+00> : vector<2x84xf32>
    %10 = tpu.matmul %8, %9, %cst_8 {dimension_numbers = #tpu.dot_dimension_numbers<[1], [0], [0], [1], [0, 0, 1, 1], [], []>} : vector<2x120xbf16>, vector<120x84xbf16>, vector<2x84xf32> -> vector<2x84xf32>
    %c0_9 = arith.constant 0 : index
    %c0_10 = arith.constant 0 : index
    %11 = vector.load %arg5[%c0_9, %c0_10] : memref<1x84xf32, #tpu.memory_space<vmem>>, vector<1x84xf32>
    %12 = vector.broadcast %11 : vector<1x84xf32> to vector<2x84xf32>
    %13 = arith.addf %10, %12 : vector<2x84xf32>
    %cst_11 = arith.constant 0.000000e+00 : f32
    %14 = vector.broadcast %cst_11 : f32 to vector<2x84xf32>
    %15 = arith.maximumf %13, %14 : vector<2x84xf32>
    %16 = arith.truncf %15 : vector<2x84xf32> to vector<2x84xbf16>
    %c0_12 = arith.constant 0 : index
    %c0_13 = arith.constant 0 : index
    %17 = vector.load %arg6[%c0_12, %c0_13] : memref<84x2xbf16, #tpu.memory_space<vmem>>, vector<84x2xbf16>
    %cst_14 = arith.constant dense<0.000000e+00> : vector<2x2xf32>
    %18 = tpu.matmul %16, %17, %cst_14 {dimension_numbers = #tpu.dot_dimension_numbers<[1], [0], [0], [1], [0, 0, 1, 1], [], []>} : vector<2x84xbf16>, vector<84x2xbf16>, vector<2x2xf32> -> vector<2x2xf32>
    %c0_15 = arith.constant 0 : index
    %c0_16 = arith.constant 0 : index
    %19 = vector.load %arg7[%c0_15, %c0_16] : memref<1x2xf32, #tpu.memory_space<vmem>>, vector<1x2xf32>
    %20 = vector.broadcast %19 : vector<1x2xf32> to vector<2x2xf32>
    %21 = arith.addf %18, %20 : vector<2x2xf32>
    %c0_17 = arith.constant 0 : index
    %c0_18 = arith.constant 0 : index
    %22 = vector.load %arg8[%c0_17, %c0_18] : memref<2x2xf32, #tpu.memory_space<vmem>>, vector<2x2xf32>
    tpu.vector_store %arg8[%c0_17, %c0_18], %21 {strides = array<i32>} : memref<2x2xf32, #tpu.memory_space<vmem>>, vector<2x2xf32>,
    return
  }
  func.func @transform_0(%arg0: i32) -> (i32, i32) {
    %c0_i32 = arith.constant 0 : i32
    %c0_i32_0 = arith.constant 0 : i32
    return %arg0, %c0_i32 : i32, i32
  }
  func.func @transform_1(%arg0: i32) -> (i32, i32) {
    %c0_i32 = arith.constant 0 : i32
    %c0_i32_0 = arith.constant 0 : i32
    %c0_i32_1 = arith.constant 0 : i32
    return %c0_i32, %c0_i32_0 : i32, i32
  }
  func.func @transform_2(%arg0: i32) -> (i32, i32) {
    %c0_i32 = arith.constant 0 : i32
    %c0_i32_0 = arith.constant 0 : i32
    %c0_i32_1 = arith.constant 0 : i32
    return %c0_i32, %c0_i32_0 : i32, i32
  }
  func.func @transform_3(%arg0: i32) -> (i32, i32) {
    %c0_i32 = arith.constant 0 : i32
    %c0_i32_0 = arith.constant 0 : i32
    %c0_i32_1 = arith.constant 0 : i32
    return %c0_i32, %c0_i32_0 : i32, i32
  }
  func.func @transform_4(%arg0: i32) -> (i32, i32) {
    %c0_i32 = arith.constant 0 : i32
    %c0_i32_0 = arith.constant 0 : i32
    %c0_i32_1 = arith.constant 0 : i32
    return %c0_i32, %c0_i32_0 : i32, i32
  }
  func.func @transform_5(%arg0: i32) -> (i32, i32) {
    %c0_i32 = arith.constant 0 : i32
    %c0_i32_0 = arith.constant 0 : i32
    %c0_i32_1 = arith.constant 0 : i32
    return %c0_i32, %c0_i32_0 : i32, i32
  }
  func.func @transform_6(%arg0: i32) -> (i32, i32) {
    %c0_i32 = arith.constant 0 : i32
    %c0_i32_0 = arith.constant 0 : i32
    %c0_i32_1 = arith.constant 0 : i32
    return %c0_i32, %c0_i32_0 : i32, i32
  }
  func.func @transform_7(%arg0: i32) -> (i32, i32) {
    %c0_i32 = arith.constant 0 : i32
    %c0_i32_0 = arith.constant 0 : i32
    return %arg0, %c0_i32 : i32, i32
  }
}

</mosaic_0001>

<bundles_post_ra>
// kernel: net_forward.3
= control target key start
LH: loop header
LB: loop body
LE: loop exit
PB: predicated region body
PF: predicated region fallthrough
CT: control target
= control target key end

     0   :  { %v1880_v1 = vmov 0   ;;  %vm81_vm0 = vsmask.f32 7424  ;;  %vm173_vm1 = vcmask 785408   ;;  %vm811_vm2 = vcmask 1045504   ;;  %s2494_s1 = inlined_call_operand.vmem [shape: bf16[5,96,168], index: 1, kind: input, shape index: {}]   ;;  %s2495_s0 = inlined_call_operand.vmem [shape: bf16[1,64,96], index: 0, kind: input, shape index: {}]   ;;  %s2496_s3 = inlined_call_operand.vmem [shape: bf16[168,84], index: 3, kind: input, shape index: {}]   ;;  %s2497_s4 = inlined_call_operand.vmem [shape: bf16[168,84], index: 4, kind: input, shape index: {}]   ;;  %s2498_s2 = inlined_call_operand.vmem [shape: f32[1,168], index: 2, kind: input, shape index: {}]   ;;  %s2499_s5 = inlined_call_operand.vmem [shape: bf16[28,60], index: 5, kind: input, shape index: {}]   ;;  %s2500_s6 = inlined_call_operand.vmem [shape: bf16[28,60], index: 6, kind: input, shape index: {}]   ;;  %s2501_s7 = inlined_call_operand.vmem [shape: bf16[1,28,84], index: 7, kind: output, shape index: {}]  }
   0x1   :  { %v1756_v0 = vld [vmem:[%s2494_s1 + $0xb4] ss:$8 sps:$4 sm:$0xff]   ;;  %218 = vmatprep.mubr.bf16.mxu0 %v1880_v1  ;;  %363 = vmatprep.mubr.bf16.mxu1 %v1880_v1  ;;  %v1760_v3 = vld [vmem:[%s2494_s1 + $0xb0] ss:$8 sps:$4 sm:$0xff]   ;;  %v1762_v5 = vld [vmem:[%s2494_s1 + $0xa4] ss:$8 sps:$4 sm:$0xff]  }
   0x2   :  { %v1758_v2 = vld [vmem:[%s2494_s1 + $0x54] ss:$8 sps:$4 sm:$0xff]   ;;  %190 = vmatprep.subr.bf16.mxu0 %v1756_v0  ;;  %v1761_v4 = vld [vmem:[%s2494_s1 + $0x50] ss:$8 sps:$4 sm:$0xff]   ;;  %v1764_v6 = vld [vmem:[%s2494_s1 + $0x44] ss:$8 sps:$4 sm:$0xff]  }
   0x3   :  { %335 = vmatprep.subr.bf16.mxu1 %v1758_v2  ;;  %191 = vmatpush1.bf16.msra.mxu0 %v1760_v3  ;;  %v1766_v7 = vld [vmem:[%s2494_s1 + $0xa0] ss:$8 sps:$4 sm:$0xff]   ;;  %v1768_v9 = vld [vmem:[%s2494_s1 + $0x94] ss:$8 sps:$4 sm:$0xff]   ;;  %v1772_v11 = vld [vmem:[%s2494_s1 + $0x90] ss:$8 sps:$4 sm:$0xff]  }
   0x4   :  { %336 = vmatpush1.bf16.msra.mxu1 %v1761_v4  ;;  %192 = vmatprep.subr.bf16.mxu0 %v1762_v5  ;;  %v1767_v8 = vld [vmem:[%s2494_s1 + $0x40] ss:$8 sps:$4 sm:$0xff]   ;;  %v1770_v10 = vld [vmem:[%s2494_s1 + $0x34] ss:$8 sps:$4 sm:$0xff]   ;;  %v1773_v12 = vld [vmem:[%s2494_s1 + $0x30] ss:$8 sps:$4 sm:$0xff]  }
   0x5   :  { %337 = vmatprep.subr.bf16.mxu1 %v1764_v6  ;;  %v1774_v13 = vld [vmem:[%s2494_s1 + $0x84] ss:$8 sps:$4 sm:$0xff]   ;;  %v1778_v15 = vld [vmem:[%s2494_s1 + $0x80] ss:$8 sps:$4 sm:$0xff]   ;;  %v1780_v17 = vld [vmem:[%s2494_s1 + $0x74] ss:$8 sps:$4 sm:$0xff]  }
   0x6   :  { %v1776_v14 = vld [vmem:[%s2494_s1 + $0x24] ss:$8 sps:$4 sm:$0xff]   ;;  %v1779_v16 = vld [vmem:[%s2494_s1 + $0x20] ss:$8 sps:$4 sm:$0xff]   ;;  %v1782_v18 = vld [vmem:[%s2494_s1 + $0x14] ss:$8 sps:$4 sm:$0xff]  }
   0x7   :  { %193 = vmatpush1.bf16.msra.mxu0 %v1766_v7  ;;  %v1784_v19 = vld [vmem:[%s2494_s1 + $0x70] ss:$8 sps:$4 sm:$0xff]   ;;  %v1786_v21 = vld [vmem:[%s2494_s1 + $0x64] ss:$8 sps:$4 sm:$0xff]   ;;  %v27_v23 = vld [vmem:[%s2495_s0] sm:$0xf] }
   0x8   :  { %338 = vmatpush1.bf16.msra.mxu1 %v1767_v8  ;;  %194 = vmatprep.subr.bf16.mxu0 %v1768_v9  ;;  %v1785_v20 = vld [vmem:[%s2494_s1 + $0x10] ss:$8 sps:$4 sm:$0xff]   ;;  %v1788_v22 = vld [vmem:[%s2494_s1 + $0x4] ss:$8 sps:$4 sm:$0xff]   ;;  %v1790_v27 = vld [vmem:[%s2494_s1 + $0x60] ss:$8 sps:$4 sm:$0xff]  }
   0x9   :  { %339 = vmatprep.subr.bf16.mxu1 %v1770_v10  ;;  %v1995_v24 = vld [vmem:[%s2495_s0 + $0x4] sm:$0xf]  ;;  %v2001_v26 = vld [vmem:[%s2495_s0 + $0x8] sm:$0xff]   ;;  %v2013_v32 = vld [vmem:[%s2495_s0 + $0x10] sm:$0xff]   ;;  %vm421_vm3 = vcmask 1046528   ;;  %vm1129_vm5 = vcmask 1043456  }
   0xa   :  { %v1547_v25 = vcombine.low %v27_v23, %v1995_v24  ;;  %v90_v30 = vshll.u32 %v2001_v26, 16  ;;  %v1791_v31 = vld [vmem:[%s2494_s1] ss:$8 sps:$4 sm:$0xff]   ;;  %v1797_v35 = vld [vmem:[%s2494_s1 + $0x114] ss:$8 sps:$4 sm:$0xff]   ;;  %v94_v38 = vshrl.u32 %v2001_v26, 16 }
   0xb   :  { %195 = vmatpush1.bf16.msra.mxu0 %v1772_v11  ;;  %v1800_v36 = vld [vmem:[%s2494_s1 + $0x174] ss:$8 sps:$4 sm:$0xff]   ;;  %v98_v39 = vshll.u32 %v2013_v32, 16  ;;  %v1795_v40 = vld [vmem:[%s2494_s1 + $0x110] ss:$8 sps:$4 sm:$0xff]   ;;  %v813_v47 = vrot.slane %v2001_v26, 2 }
   0xc   :  { %340 = vmatpush1.bf16.msra.mxu1 %v1773_v12  ;;  %196 = vmatprep.subr.bf16.mxu0 %v1774_v13  ;;  %v83_v28 = vshrl.u32 %v1547_v25, 16  ;;  %v85_v29 = vshll.u32 %v1547_v25, 16  ;;  %v92_v34 = vrot.slane %v90_v30, 1  ;;  %v1798_v41 = vld [vmem:[%s2494_s1 + $0x170] ss:$8 sps:$4 sm:$0xff]   ;;  %v815_v48 = vrot.slane %v2013_v32, 2 }
   0xd   :  { %341 = vmatprep.subr.bf16.mxu1 %v1776_v14  ;;  %v2035_v43 = vld [vmem:[%s2495_s0 + $0x18] sm:$0xf]  ;;  %v47_v44 = vld [vmem:[%s2495_s0 + $0x1c] sm:$0x7]  ;;  %v1803_v45 = vld [vmem:[%s2494_s1 + $0x104] ss:$8 sps:$4 sm:$0xff]  }
   0xe   :  { %v87_v33 = vrot.slane %v85_v29, 1  ;;  %v1806_v46 = vld [vmem:[%s2494_s1 + $0x164] ss:$8 sps:$4 sm:$0xff]   ;;  %v96_v49 = vor.u32 %v94_v38, %v92_v34  ;;  %v100_v50 = vrot.slane %v98_v39, 1  ;;  %v2057_v51 = vcombine.low %v2035_v43, %v47_v44  ;;  %v1801_v52 = vld [vmem:[%s2494_s1 + $0x100] ss:$8 sps:$4 sm:$0xff]  }
   0xf   :  { %197 = vmatpush1.bf16.msra.mxu0 %v1778_v15  ;;  %v1804_v53 = vld [vmem:[%s2494_s1 + $0x160] ss:$8 sps:$4 sm:$0xff]   ;;  %v2070_v54 = vsel %vm811_vm2, %v813_v47, %v815_v48  ;;  %v1810_v55 = vld [vmem:[%s2494_s1 + $0xf4] ss:$8 sps:$4 sm:$0xff]   ;;  %v102_v58 = vshrl.u32 %v2013_v32, 16  ;;  %vm1116_vm6 = vcmask 326656  }
  0x10   :  { %342 = vmatpush1.bf16.msra.mxu1 %v1779_v16  ;;  %198 = vmatprep.subr.bf16.mxu0 %v1780_v17  ;;  %v88_v37 = vor.u32 %v87_v33, %v83_v28  ;;  %v1813_v56 = vld [vmem:[%s2494_s1 + $0x154] ss:$8 sps:$4 sm:$0xff]   ;;  %v101_v57 = vsel %vm81_vm0, %v96_v49, %v100_v50  ;;  %v106_v59 = vshll.u32 %v2057_v51, 16  ;;  %v1808_v60 = vld [vmem:[%s2494_s1 + $0xf0] ss:$8 sps:$4 sm:$0xff]   ;;  %v110_v14 = vshrl.u32 %v2057_v51, 16 }
  0x11   :  { %343 = vmatprep.subr.bf16.mxu1 %v1782_v18  ;;  %v1811_v61 = vld [vmem:[%s2494_s1 + $0x150] ss:$8 sps:$4 sm:$0xff]   ;;  %v1816_v62 = vld [vmem:[%s2494_s1 + $0xe4] ss:$8 sps:$4 sm:$0xff]   ;;  %v1814_v0 = vld [vmem:[%s2494_s1 + $0xe0] ss:$8 sps:$4 sm:$0xff]   ;;  %v104_v2 = vor.u32 %v102_v58, %v100_v50 }
  0x12   :  { %v93_v42 = vsel %vm81_vm0, %v88_v37, %v92_v34  ;;  %v1819_v63 = vld [vmem:[%s2494_s1 + $0x144] ss:$8 sps:$4 sm:$0xff]   ;;  %v108_v3 = vrot.slane %v106_v59, 1  ;;  %v1817_v4 = vld [vmem:[%s2494_s1 + $0x140] ss:$8 sps:$4 sm:$0xff]   ;;  %v616_v28 = vrot.slane %v94_v38, 1 }
  0x13   :  { %199 = vmatpush1.bf16.msra.mxu0 %v1784_v19  ;;  %v1823_v5 = vld [vmem:[%s2494_s1 + $0xd4] ss:$8 sps:$4 sm:$0xff]   ;;  %v404_v6 = vld [vmem:[%s2495_s0] sm:$0xe]  ;;  %v1821_v10 = vld [vmem:[%s2494_s1 + $0xd0] ss:$8 sps:$4 sm:$0xff]  }
  0x14   :  { %344 = vmatpush1.bf16.msra.mxu1 %v1785_v20  ;;  %200 = vmatprep.subr.bf16.mxu0 %v1786_v21  ;;  %v1826_v7 = vld [vmem:[%s2494_s1 + $0x134] ss:$8 sps:$4 sm:$0xff]   ;;  %v109_v8 = vsel %vm81_vm0, %v104_v2, %v108_v3  ;;  %v1596_v9 = vcombine.low %v404_v6, %v1995_v24  ;;  %v1824_v11 = vld [vmem:[%s2494_s1 + $0x130] ss:$8 sps:$4 sm:$0xff]   ;;  %v1829_v12 = vld [vmem:[%s2494_s1 + $0xc4] ss:$8 sps:$4 sm:$0xff]  }
  0x15   :  { %345 = vmatprep.subr.bf16.mxu1 %v1788_v22  ;;  %v1832_v13 = vld [vmem:[%s2494_s1 + $0x124] ss:$8 sps:$4 sm:$0xff]   ;;  %v34_v15 = vld [vmem:[%s2495_s0 + $0x1c] sm:$0x3]  ;;  %v1827_v16 = vld [vmem:[%s2494_s1 + $0xc0] ss:$8 sps:$4 sm:$0xff]   ;;  %v112_v22 = vor.u32 %v110_v14, %v108_v3 }
  0x16   :  { %v609_v17 = vshrl.u32 %v1596_v9, 16  ;;  %v612_v18 = vshll.u32 %v1596_v9, 16  ;;  %v1830_v19 = vld [vmem:[%s2494_s1 + $0x120] ss:$8 sps:$4 sm:$0xff]   ;;  %v1836_v20 = vld [vmem:[%s2494_s1 + $0x1d4] ss:$8 sps:$4 sm:$0xff]   ;;  %v1567_v23 = vcombine.low %v2035_v43, %v34_v15 }
  0x17   :  { %201 = vmatpush1.bf16.msra.mxu0 %v1790_v27  ;;  %v794_v21 = vld [vmem:[%s2495_s0] sm:$0xc]  ;;  %v617_v27 = vrot.slane %v90_v30, 2  ;;  %v422_v30 = vrot.slane %v1596_v9, 1  ;;  %v423_v34 = vrot.slane %v2001_v26, 1  ;;  %v620_v38 = vrot.slane %v102_v58, 1 }
  0x18   :  { %346 = vmatpush1.bf16.msra.mxu1 %v1791_v31  ;;  %505 = vmatprep.subr.bf16.mxu0 %v1797_v35  ;;  %v611_v29 = vrot.slane %v609_v17, 1  ;;  %v614_v31 = vrot.slane %v612_v18, 2  ;;  %vm607_vm4 = vsmask.f32 6400  ;;  %v590_v37 = vld [vmem:[%s2495_s0 + $0x1c] sm:$0xf] }
  0x19   :  { %709 = vmatprep.subr.bf16.mxu1 %v1800_v36  ;;  %v618_v36 = vor.u32 %v617_v27, %v616_v28  ;;  %v1834_v44 = vld [vmem:[%s2494_s1 + $0x1d0] ss:$8 sps:$4 sm:$0xff]   ;;  %v1837_v49 = vld [vmem:[%s2494_s1 + $0x1c0] ss:$8 sps:$4 sm:$0xff]   ;;  %v1842_v50 = vld [vmem:[%s2494_s1 + $0x1b4] ss:$8 sps:$4 sm:$0xff]  }
  0x1a   :  { %1563 = vmatmul.mubr.msk.bf16.vlgmr.msra.gmra.mxu0 %vm173_vm1, %v93_v42  ;;  %v615_v35 = vor.u32 %v614_v31, %v611_v29  ;;  %v1625_v42 = vcombine.low %v2035_v43, %v590_v37  ;;  %v1846_v58 = vld [vmem:[%s2494_s1 + $0x1a4] ss:$8 sps:$4 sm:$0xff]   ;;  %v427_v59 = vrot.slane %v2057_v51, 1  ;;  %v1847_v51 = vld [vmem:[%s2494_s1 + $0x190] ss:$8 sps:$4 sm:$0xff]   ;;  %vm1376_vm7 = vcmask 490496  }
  0x1b   :  { %1580 = vmatmul.mubr.msk.bf16.vlgmr.msra.gmra.mxu1 %vm173_vm1, %v1547_v25  ;;  %228 = vmatprep.mubr.bf16.mxu0 %v1880_v1  ;;  %v1654_v25 = vcombine.low %v794_v21, %v1995_v24  ;;  %v1852_v2 = vld [vmem:[%s2494_s1 + $0x184] ss:$8 sps:$4 sm:$0xff]   ;;  %v1850_v3 = vld [vmem:[%s2494_s1 + $0x180] ss:$8 sps:$4 sm:$0xff]   ;;  %v1854_v6 = vld [vmem:[%s2496_s3 + $0x38] sm:$0xff]   ;;  %vm1525_vm8 = vcmask 683008  }
  0x1c   :  { %373 = vmatprep.mubr.bf16.mxu1 %v1880_v1  ;;  %506 = vmatpush1.bf16.msra.mxu0 %v1795_v40  ;;  %v424_v40 = vsel %vm421_vm3, %v422_v30, %v423_v34  ;;  %v625_v43 = vshrl.u32 %v1625_v42, 16  ;;  %v1860_v9 = vld [vmem:[%s2496_s3 + $0x20] sm:$0xff]   ;;  %v1865_v14 = vld [vmem:[%s2497_s4 + $0x10] sm:$0xff]   ;;  %v1866_v15 = vld [vmem:[%s2496_s3 + $0x8] sm:$0xff]   ;;  %vm1529_vm9 = vcmask 680960  }
  0x1d   :  { %710 = vmatpush1.bf16.msra.mxu1 %v1798_v41  ;;  %507 = vmatprep.subr.bf16.mxu0 %v1803_v45  ;;  %v812_v33 = vrot.slane %v1654_v25, 2  ;;  %v619_v41 = vsel %vm607_vm4, %v615_v35, %v618_v36  ;;  %v1839_v45 = vld [vmem:[%s2494_s1 + $0x1c4] ss:$8 sps:$4 sm:$0xff]  }
  0x1e   :  { %711 = vmatprep.subr.bf16.mxu1 %v1806_v46  ;;  %v425_v46 = vrot.slane %v2013_v32, 1  ;;  %v1868_v17 = vld [vmem:[%s2496_s3] sm:$0xff]   ;;  %v1873_v25 = vld [vmem:[%s2497_s4 + $0x48] sm:$0xff]  }
  0x1f   :  { %v2162_v24 = vsel %vm811_vm2, %v812_v33, %v813_v47  ;;  %v628_v47 = vshll.u32 %v1625_v42, 16  ;;  %v1869_v18 = vld [vmem:[%s2497_s4] sm:$0xff]  }
  0x20   :  { %508 = vmatpush1.bf16.msra.mxu0 %v1801_v52  ;;  %v426_v52 = vsel %vm421_vm3, %v423_v34, %v425_v46  ;;  %v1874_v27 = vld [vmem:[%s2496_s3 + $0x40] sm:$0xff]  }
  0x21   :  { %712 = vmatpush1.bf16.msra.mxu1 %v1804_v53  ;;  %509 = vmatprep.subr.bf16.mxu0 %v1810_v55  ;;  %v627_v55 = vrot.slane %v625_v43, 1  ;;  %v1875_v28 = vld [vmem:[%s2497_s4 + $0x40] sm:$0xff]  }
  0x22   :  { %713 = vmatprep.subr.bf16.mxu1 %v1813_v56  ;;  %1564 = vmatmul.mubr.msk.bf16.gmra.mxu0 %vm173_vm1, %v101_v57  ;;  %v630_v56 = vrot.slane %v628_v47, 2  ;;  %v1840_v57 = vld [vmem:[%s2494_s1 + $0x1b0] ss:$8 sps:$4 sm:$0xff]  }
  0x23   :  { %1581 = vmatmul.mubr.msk.bf16.gmra.mxu1 %vm173_vm1, %v2001_v26  ;;  %238 = vmatprep.mubr.bf16.mxu0 %v1880_v1  ;;  %v621_v26 = vrot.slane %v98_v39, 2 }
  0x24   :  { %383 = vmatprep.mubr.bf16.mxu1 %v1880_v1  ;;  %510 = vmatpush1.bf16.msra.mxu0 %v1808_v60  ;;  %v631_v60 = vor.u32 %v630_v56, %v627_v55 }
  0x25   :  { %714 = vmatpush1.bf16.msra.mxu1 %v1811_v61  ;;  %511 = vmatprep.subr.bf16.mxu0 %v1816_v62  ;;  %v622_v39 = vor.u32 %v621_v26, %v620_v38  ;;  %v1844_v61 = vld [vmem:[%s2494_s1 + $0x1a0] ss:$8 sps:$4 sm:$0xff]   ;;  %v1849_v62 = vld [vmem:[%s2494_s1 + $0x194] ss:$8 sps:$4 sm:$0xff]  }
  0x26   :  { %715 = vmatprep.subr.bf16.mxu1 %v1819_v63  ;;  %v428_v63 = vsel %vm421_vm3, %v425_v46, %v427_v59 }
  0x27   :  { %v623_v53 = vsel %vm607_vm4, %v618_v36, %v622_v39 }
  0x28   :  { %512 = vmatpush1.bf16.msra.mxu0 %v1814_v0  ;;  %v632_v0 = vsel %vm607_vm4, %v622_v39, %v631_v60 }
  0x29   :  { %716 = vmatpush1.bf16.msra.mxu1 %v1817_v4  ;;  %513 = vmatprep.subr.bf16.mxu0 %v1823_v5  ;;  %v817_v4 = vrot.slane %v1625_v42, 2 }
  0x2a   :  { %717 = vmatprep.subr.bf16.mxu1 %v1826_v7  ;;  %1565 = vmatmul.mubr.msk.bf16.gmra.mxu0 %vm173_vm1, %v109_v8  ;;  %v1858_v7 = vld [vmem:[%s2496_s3 + $0x28] sm:$0xff]  }
  0x2b   :  { %1582 = vmatmul.mubr.msk.bf16.gmra.mxu1 %vm173_vm1, %v2013_v32  ;;  %248 = vmatprep.mubr.bf16.mxu0 %v1880_v1  ;;  %v818_v5 = vsel %vm811_vm2, %v815_v48, %v817_v4  ;;  %v1856_v32 = vld [vmem:[%s2496_s3 + $0x30] sm:$0xff]   ;;  %v1859_v8 = vld [vmem:[%s2497_s4 + $0x28] sm:$0xff]  }
  0x2c   :  { %393 = vmatprep.mubr.bf16.mxu1 %v1880_v1  ;;  %514 = vmatpush1.bf16.msra.mxu0 %v1821_v10  ;;  %v1857_v48 = vld [vmem:[%s2497_s4 + $0x30] sm:$0xff]   ;;  %v1861_v10 = vld [vmem:[%s2497_s4 + $0x20] sm:$0xff]  }
  0x2d   :  { %718 = vmatpush1.bf16.msra.mxu1 %v1824_v11  ;;  %515 = vmatprep.subr.bf16.mxu0 %v1829_v12  ;;  %v1862_v11 = vld [vmem:[%s2496_s3 + $0x18] sm:$0xff]  }
  0x2e   :  { %719 = vmatprep.subr.bf16.mxu1 %v1832_v13  ;;  %v1863_v12 = vld [vmem:[%s2497_s4 + $0x18] sm:$0xff]   ;;  %v1864_v13 = vld [vmem:[%s2496_s3 + $0x10] sm:$0xff]  }
  0x30   :  { %516 = vmatpush1.bf16.msra.mxu0 %v1827_v16  ;;  %v1867_v16 = vld [vmem:[%s2497_s4 + $0x8] sm:$0xff]  }
  0x31   :  { %720 = vmatpush1.bf16.msra.mxu1 %v1830_v19  ;;  %895 = vmatprep.subr.bf16.mxu0 %v1836_v20  ;;  %v1870_v19 = vld [vmem:[%s2496_s3 + $0x50] ss:$0 sps:$4 sm:$0xff]  }
  0x32   :  { %1133 = vmatprep.subr.bf16.mxu1 %v1880_v1  ;;  %1566 = vmatmul.mubr.msk.bf16.gmra.mxu0 %vm173_vm1, %v112_v22  ;;  %v1871_v20 = vld [vmem:[%s2497_s4 + $0x50] ss:$0 sps:$4 sm:$0xff]   ;;  %v1131_v21 = vsel %vm1129_vm5, %v1870_v19, 0 }
  0x33   :  { %1583 = vmatmul.mubr.msk.bf16.gmra.mxu1 %vm173_vm1, %v1567_v23  ;;  %533 = vmatprep.mubr.bf16.mxu0 %v1880_v1  ;;  %v1283_v22 = vsel %vm1129_vm5, %v1871_v20, 0  ;;  %v1872_v23 = vld [vmem:[%s2496_s3 + $0x48] sm:$0xff]  }
  0x34   :  { %737 = vmatprep.mubr.bf16.mxu1 %v1880_v1 }
  0x3a   :  { %1609 = vmatmul.mubr.msk.bf16.vlgmr.msra.gmra.mxu0 %vm173_vm1, %v424_v40 }
  0x3b   :  { %1638 = vmatmul.mubr.msk.bf16.vlgmr.msra.gmra.mxu1 %vm173_vm1, %v619_v41  ;;  %543 = vmatprep.mubr.bf16.mxu0 %v1880_v1 }
  0x3c   :  { %747 = vmatprep.mubr.bf16.mxu1 %v1880_v1  ;;  %896 = vmatpush1.bf16.msra.mxu0 %v1834_v44 }
  0x3d   :  { %897 = vmatprep.subr.bf16.mxu0 %v1839_v45  ;;  %1134 = vmatpush1.bf16.msra.mxu1 %v1854_v6 }
  0x3e   :  { %1135 = vmatprep.subr.bf16.mxu1 %v1880_v1 }
  0x40   :  { %898 = vmatpush1.bf16.msra.mxu0 %v1837_v49 }
  0x41   :  { %899 = vmatprep.subr.bf16.mxu0 %v1842_v50  ;;  %1136 = vmatpush1.bf16.msra.mxu1 %v1856_v32 }
  0x42   :  { %1610 = vmatmul.mubr.msk.bf16.gmra.mxu0 %vm173_vm1, %v426_v52  ;;  %1137 = vmatprep.subr.bf16.mxu1 %v1880_v1 }
  0x43   :  { %1639 = vmatmul.mubr.msk.bf16.gmra.mxu1 %vm173_vm1, %v623_v53  ;;  %553 = vmatprep.mubr.bf16.mxu0 %v1880_v1 }
  0x44   :  { %757 = vmatprep.mubr.bf16.mxu1 %v1880_v1  ;;  %900 = vmatpush1.bf16.msra.mxu0 %v1840_v57 }
  0x45   :  { %901 = vmatprep.subr.bf16.mxu0 %v1846_v58  ;;  %1138 = vmatpush1.bf16.msra.mxu1 %v1858_v7 }
  0x46   :  { %1139 = vmatprep.subr.bf16.mxu1 %v1880_v1 }
  0x48   :  { %902 = vmatpush1.bf16.msra.mxu0 %v1844_v61 }
  0x49   :  { %903 = vmatprep.subr.bf16.mxu0 %v1849_v62  ;;  %1140 = vmatpush1.bf16.msra.mxu1 %v1860_v9 }
  0x4a   :  { %1611 = vmatmul.mubr.msk.bf16.gmra.mxu0 %vm173_vm1, %v428_v63  ;;  %1141 = vmatprep.subr.bf16.mxu1 %v1880_v1 }
  0x4b   :  { %1640 = vmatmul.mubr.msk.bf16.gmra.mxu1 %vm173_vm1, %v632_v0  ;;  %563 = vmatprep.mubr.bf16.mxu0 %v1880_v1 }
  0x4c   :  { %767 = vmatprep.mubr.bf16.mxu1 %v1880_v1  ;;  %904 = vmatpush1.bf16.msra.mxu0 %v1847_v51 }
  0x4d   :  { %905 = vmatprep.subr.bf16.mxu0 %v1852_v2  ;;  %1142 = vmatpush1.bf16.msra.mxu1 %v1862_v11 }
  0x4e   :  { %1143 = vmatprep.subr.bf16.mxu1 %v1880_v1 }
  0x50   :  { %906 = vmatpush1.bf16.msra.mxu0 %v1850_v3 }
  0x51   :  { %1285 = vmatprep.subr.bf16.mxu0 %v1880_v1  ;;  %1144 = vmatpush1.bf16.msra.mxu1 %v1864_v13 }
  0x52   :  { %1612 = vmatmul.mubr.msk.bf16.gmra.mxu0 %vm173_vm1, %v427_v59  ;;  %1145 = vmatprep.subr.bf16.mxu1 %v1880_v1 }
  0x53   :  { %1641 = vmatmul.mubr.msk.bf16.gmra.mxu1 %vm173_vm1, %v631_v60  ;;  %923 = vmatprep.mubr.bf16.mxu0 %v1880_v1 }
  0x55   :  { %1146 = vmatpush1.bf16.msra.mxu1 %v1866_v15  ;;  %v982_v15 = vlaneseq }
  0x56   :  { %1147 = vmatprep.subr.bf16.mxu1 %v1880_v1 }
  0x59   :  { %1148 = vmatpush1.bf16.msra.mxu1 %v1868_v17 }
  0x5a   :  { %1667 = vmatmul.mubr.msk.bf16.vlgmr.msra.gmra.mxu0 %vm173_vm1, %v2162_v24  ;;  %1159 = vmatprep.subr.bf16.mxu1 %v1880_v1 }
  0x5b   :  { %933 = vmatprep.mubr.bf16.mxu0 %v1880_v1 }
  0x5d   :  { %1160 = vmatpush2.bf16.msra.mxu1 %v1131_v21  ;;  %v983_v21 = vshrl.u32 %v982_v15, 7 }
  0x5e   :  { %1161 = vmatprep.subr.bf16.mxu1 %v1880_v1 }
  0x61   :  { %1162 = vmatpush2.bf16.msra.mxu1 %v1872_v23 }
  0x62   :  { %1668 = vmatmul.mubr.msk.bf16.gmra.mxu0 %vm173_vm1, %v2070_v54  ;;  %v1855_v54 = vld [vmem:[%s2497_s4 + $0x38] sm:$0xff]   ;;  %1163 = vmatprep.subr.bf16.mxu1 %v1880_v1 }
  0x63   :  { %943 = vmatprep.mubr.bf16.mxu0 %v1880_v1  ;;  %1286 = vmatpush1.bf16.msra.mxu0 %v1855_v54 }
  0x64   :  { %1287 = vmatprep.subr.bf16.mxu0 %v1880_v1 }
  0x65   :  { %1164 = vmatpush2.bf16.msra.mxu1 %v1874_v27 }
  0x67   :  { %1288 = vmatpush1.bf16.msra.mxu0 %v1857_v48 }
  0x68   :  { %1289 = vmatprep.subr.bf16.mxu0 %v1880_v1 }
  0x6a   :  { %1669 = vmatmul.mubr.msk.bf16.gmra.mxu0 %vm173_vm1, %v818_v5 }
  0x6b   :  { %953 = vmatprep.mubr.bf16.mxu0 %v1880_v1  ;;  %1290 = vmatpush1.bf16.msra.mxu0 %v1859_v8 }
  0x6c   :  { %1291 = vmatprep.subr.bf16.mxu0 %v1880_v1 }
  0x6f   :  { %1292 = vmatpush1.bf16.msra.mxu0 %v1861_v10 }
  0x70   :  { %1293 = vmatprep.subr.bf16.mxu0 %v1880_v1 }
  0x72   :  { %1670 = vmatmul.mubr.msk.bf16.gmra.mxu0 %vm173_vm1, %v817_v4 }
  0x73   :  { %1294 = vmatpush1.bf16.msra.mxu0 %v1863_v12 }
  0x74   :  { %1295 = vmatprep.subr.bf16.mxu0 %v1880_v1 }
  0x77   :  { %1296 = vmatpush1.bf16.msra.mxu0 %v1865_v14 }
  0x78   :  { %1297 = vmatprep.subr.bf16.mxu0 %v1880_v1 }
  0x7b   :  { %1298 = vmatpush1.bf16.msra.mxu0 %v1867_v16 }
  0x7c   :  { %1299 = vmatprep.subr.bf16.mxu0 %v1880_v1 }
  0x7f   :  { %1300 = vmatpush1.bf16.msra.mxu0 %v1869_v18 }
  0x80   :  { %1311 = vmatprep.subr.bf16.mxu0 %v1880_v1 }
  0x83   :  { %1312 = vmatpush2.bf16.msra.mxu0 %v1283_v22 }
  0x84   :  { %1313 = vmatprep.subr.bf16.mxu0 %v1880_v1 }
  0x87   :  { %1314 = vmatpush2.bf16.msra.mxu0 %v1873_v25 }
  0x88   :  { %1315 = vmatprep.subr.bf16.mxu0 %v1880_v1 }
  0x8b   :  { %1316 = vmatpush2.bf16.msra.mxu0 %v1875_v28 }
  0xda   :  { %v220_v29 = vpop.f32.mrf.mxu0 }
  0xdb   :  { %v365_v31 = vpop.f32.mrf.mxu1 }
  0xdc   :  { %v222_v33 = vpop.f32.mrf.mxu0  ;;  %v366_v19 = vadd.f32 %v365_v31, %v220_v29  ;;  %v980_v29 = vld [vmem:[%s2498_s2] sm:$0x3] }
  0xdd   :  { %v367_v24 = vpop.f32.mrf.mxu1 }
  0xde   :  { %v224_v30 = vpop.f32.mrf.mxu0  ;;  %v368_v18 = vadd.f32 %v367_v24, %v222_v33 }
  0xdf   :  { %v369_v34 = vpop.f32.mrf.mxu1 }
  0xe0   :  { %v226_v35 = vpop.f32.mrf.mxu0  ;;  %v370_v22 = vadd.f32 %v369_v34, %v224_v30 }
  0xe1   :  { %v371_v36 = vpop.f32.mrf.mxu1 }
  0xe2   :  { %v2330_v37 = vpop.f32.mrf.mxu0 }
  0xe3   :  { %v2332_v1 = vpop.f32.mrf.mxu1 }
  0xe4   :  { %v2334_v38 = vpop.f32.mrf.mxu0 }
  0xe5   :  { %v2336_v40 = vpop.f32.mrf.mxu1 }
  0xe6   :  { %v2338_v41 = vpop.f32.mrf.mxu0  ;;  %v378_v30 = vadd.f32 %v2336_v40, %v2334_v38 }
  0xe7   :  { %v2340_v26 = vpop.f32.mrf.mxu1 }
  0xe8   :  { %v2342_v42 = vpop.f32.mrf.mxu0 }
  0xe9   :  { %v2344_v44 = vpop.f32.mrf.mxu1 }
  0xea   :  { %v2346_v45 = vpop.f32.mrf.mxu0  ;;  %v382_v38 = vadd.f32 %v2344_v44, %v2342_v42 }
  0xeb   :  { %v2348_v46 = vpop.f32.mrf.mxu1 }
  0xec   :  { %v2350_v39 = vpop.f32.mrf.mxu0 }
  0xed   :  { %v2352_v43 = vpop.f32.mrf.mxu1 }
  0xee   :  { %v2354_v47 = vpop.f32.mrf.mxu0 }
  0xef   :  { %v2356_v49 = vpop.f32.mrf.mxu1 }
  0xf0   :  { %v2358_v50 = vpop.f32.mrf.mxu0 }
  0xf1   :  { %v2360_v52 = vpop.f32.mrf.mxu1 }
  0xf2   :  { %v2362_v53 = vpop.f32.mrf.mxu0 }
  0xf3   :  { %2502 = vst [vmem:[#allocation2_spill] sm:$0xff] %v2362_v53  ;;  %v2364_v55 = vpop.f32.mrf.mxu1 }
  0xf4   :  { %2503 = vst [vmem:[#allocation3_spill] sm:$0xff] %v2364_v55  ;;  %v2366_v56 = vpop.f32.mrf.mxu0 }
  0xf5   :  { %v2368_v57 = vpop.f32.mrf.mxu1 }
  0xf6   :  { %v2370_v58 = vpop.f32.mrf.mxu0 }
  0xf7   :  { %2504 = vst [vmem:[#allocation4_spill] sm:$0xff] %v2370_v58  ;;  %v2372_v59 = vpop.f32.mrf.mxu1  ;;  %v984_v58 = vsub.s32 0, %v983_v21 }
  0xf8   :  { %2505 = vst [vmem:[#allocation5_spill] sm:$0xff] %v2372_v59  ;;  %v2374_v60 = vpop.f32.mrf.mxu0 }
  0xf9   :  { %2506 = vst [vmem:[#allocation6_spill] sm:$0xff] %v2374_v60  ;;  %v2376_v61 = vpop.f32.mrf.mxu1 }
  0xfa   :  { %2507 = vst [vmem:[#allocation7_spill] sm:$0xff] %v2376_v61  ;;  %v535_v62 = vpop.f32.mrf.mxu0  ;;  %v372_v61 = vadd.f32 %v371_v36, %v226_v35  ;;  %v376_v35 = vadd.f32 %v2332_v1, %v2330_v37 }
  0xfb   :  { %v739_v63 = vpop.f32.mrf.mxu1  ;;  %v574_v25 = vadd.f32 %v535_v62, %v366_v19 }
  0xfc   :  { %v537_v0 = vpop.f32.mrf.mxu0 }
  0xfd   :  { %v741_v51 = vpop.f32.mrf.mxu1  ;;  %v575_v23 = vadd.f32 %v537_v0, %v368_v18  ;;  %v778_v31 = vadd.f32 %v739_v63, %v574_v25 }
  0xfe   :  { %v539_v2 = vpop.f32.mrf.mxu0 }
  0xff   :  { %v743_v4 = vpop.f32.mrf.mxu1  ;;  %v576_v60 = vadd.f32 %v539_v2, %v370_v22  ;;  %v779_v55 = vadd.f32 %v741_v51, %v575_v23  ;;  %v2407_v51 = vrot.slane %v980_v29, %v984_v58  ;;  %v380_v2 = vadd.f32 %v2340_v26, %v2338_v41 }
 0x100   :  { %v541_v3 = vpop.f32.mrf.mxu0  ;;  %v386_v22 = vadd.f32 %v2348_v46, %v2346_v45 }
 0x101   :  { %v745_v6 = vpop.f32.mrf.mxu1  ;;  %v577_v53 = vadd.f32 %v541_v3, %v372_v61  ;;  %v780_v34 = vadd.f32 %v743_v4, %v576_v60 }
 0x102   :  { %v545_v5 = vpop.f32.mrf.mxu0 }
 0x103   :  { %v749_v48 = vpop.f32.mrf.mxu1  ;;  %v781_v63 = vadd.f32 %v745_v6, %v577_v53  ;;  %v578_v40 = vadd.f32 %v545_v5, %v376_v35  ;;  %v388_v53 = vadd.f32 %v2352_v43, %v2350_v39 }
 0x104   :  { %v547_v54 = vpop.f32.mrf.mxu0 }
 0x105   :  { %v751_v9 = vpop.f32.mrf.mxu1  ;;  %v579_v3 = vadd.f32 %v547_v54, %v378_v30  ;;  %v782_v42 = vadd.f32 %v749_v48, %v578_v40  ;;  %v2510_v40 = vld [vmem:[#allocation3_spill] sm:$0xff] }
 0x106   :  { %v549_v32 = vpop.f32.mrf.mxu0 }
 0x107   :  { %v753_v12 = vpop.f32.mrf.mxu1  ;;  %v580_v4 = vadd.f32 %v549_v32, %v380_v2  ;;  %v783_v18 = vadd.f32 %v751_v9, %v579_v3 }
 0x108   :  { %v551_v7 = vpop.f32.mrf.mxu0 }
 0x109   :  { %v2388_v16 = vpop.f32.mrf.mxu1  ;;  %v581_v41 = vadd.f32 %v551_v7, %v382_v38  ;;  %v784_v54 = vadd.f32 %v753_v12, %v580_v4  ;;  %v390_v7 = vadd.f32 %v2356_v49, %v2354_v47  ;;  %v392_v12 = vadd.f32 %v2360_v52, %v2358_v50  ;;  %v2509_v38 = vld [vmem:[#allocation2_spill] sm:$0xff]  ;;  %v2512_v4 = vld [vmem:[#allocation5_spill] sm:$0xff] }
 0x10a   :  { %v2378_v8 = vpop.f32.mrf.mxu0 }
 0x10b   :  { %v2394_v27 = vpop.f32.mrf.mxu1  ;;  %v785_v39 = vadd.f32 %v2388_v16, %v581_v41 }
 0x10c   :  { %v2380_v10 = vpop.f32.mrf.mxu0 }
 0x10d   :  { %v761_v33 = vpop.f32.mrf.mxu1  ;;  %v583_v43 = vadd.f32 %v2380_v10, %v388_v53 }
 0x10e   :  { %v2382_v11 = vpop.f32.mrf.mxu0 }
 0x10f   :  { %v787_v50 = vadd.f32 %v761_v33, %v583_v43  ;;  %v2511_v33 = vld [vmem:[#allocation4_spill] sm:$0xff] }
 0x110   :  { %v2384_v13 = vpop.f32.mrf.mxu0 }
 0x111   :  { %v585_v52 = vadd.f32 %v2384_v13, %v392_v12  ;;  %v400_v13 = vadd.f32 %v2512_v4, %v2511_v33 }
 0x112   :  { %v2386_v14 = vpop.f32.mrf.mxu0 }
 0x113   :  { %2508 = vst [vmem:[#allocation8_spill] sm:$0xff] %v2386_v14  ;;  %v988_v14 = vsub.s32 1, %v983_v21 }
 0x114   :  { %v2390_v17 = vpop.f32.mrf.mxu0 }
 0x115   :  { %v2403_v0 = vrot.slane %v980_v29, %v988_v14 }
 0x116   :  { %v2392_v20 = vpop.f32.mrf.mxu0 }
 0x117   :  { %v588_v53 = vadd.f32 %v2392_v20, %v400_v13 }
 0x118   :  { %v2396_v28 = vpop.f32.mrf.mxu0 }
 0x11a   :  { %v925_v59 = vpop.f32.mrf.mxu0  ;;  %v2515_v41 = vld [vmem:[#allocation8_spill] sm:$0xff] }
 0x11b   :  { %v964_v36 = vadd.f32 %v925_v59, %v778_v31  ;;  %v582_v31 = vadd.f32 %v2378_v8, %v386_v22 }
 0x11c   :  { %v927_v24 = vpop.f32.mrf.mxu0 }
 0x11d   :  { %v965_v62 = vadd.f32 %v927_v24, %v779_v55  ;;  %v763_v55 = vpop.f32.mrf.mxu1  ;;  %v992_v58 = vadd.f32 %v2407_v51, %v964_v36  ;;  %v584_v24 = vadd.f32 %v2382_v11, %v390_v7  ;;  %v398_v11 = vadd.f32 %v2368_v57, %v2366_v56 }
 0x11e   :  { %v929_v61 = vpop.f32.mrf.mxu0 }
 0x11f   :  { %v966_v15 = vadd.f32 %v929_v61, %v780_v34  ;;  %v993_v14 = vadd.f32 %v2403_v0, %v965_v62  ;;  %v765_v44 = vpop.f32.mrf.mxu1  ;;  %v1008_v9 = vmax.f32 %v992_v58, 0.0  ;;  %v786_v62 = vadd.f32 %v2394_v27, %v582_v31 }
 0x120   :  { %v931_v60 = vpop.f32.mrf.mxu0  ;;  %v788_v2 = vadd.f32 %v763_v55, %v584_v24  ;;  %v789_v58 = vadd.f32 %v765_v44, %v585_v52  ;;  %v587_v56 = vadd.f32 %v2390_v17, %v398_v11 }
 0x121   :  { %v994_v37 = vadd.f32 %v2407_v51, %v966_v15  ;;  %v967_v1 = vadd.f32 %v931_v60, %v781_v63  ;;  %v1009_v32 = vmax.f32 %v993_v14, 0.0  ;;  %v769_v45 = vpop.f32.mrf.mxu1  ;;  %v396_v60 = vadd.f32 %v2510_v40, %v2509_v38 }
 0x122   :  { %v935_v59 = vpop.f32.mrf.mxu0 }
 0x123   :  { %v995_v26 = vadd.f32 %v2403_v0, %v967_v1  ;;  %v1010_v5 = vmax.f32 %v994_v37, 0.0  ;;  %v968_v23 = vadd.f32 %v935_v59, %v782_v42  ;;  %v771_v35 = vpop.f32.mrf.mxu1  ;;  %v2513_v59 = vld [vmem:[#allocation6_spill] sm:$0xff] }
 0x124   :  { %v937_v6 = vpop.f32.mrf.mxu0 }
 0x125   :  { %v1011_v19 = vmax.f32 %v995_v26, 0.0  ;;  %v969_v21 = vadd.f32 %v937_v6, %v783_v18  ;;  %v1024_v46 = vpack.c.bf16 %v1010_v5, %v1008_v9  ;;  %v996_v10 = vadd.f32 %v2407_v51, %v968_v23  ;;  %v2514_v18 = vld [vmem:[#allocation7_spill] sm:$0xff]  ;;  %v773_v42 = vpop.f32.mrf.mxu1 }
 0x126   :  { %v939_v25 = vpop.f32.mrf.mxu0  ;;  %v402_v55 = vadd.f32 %v2514_v18, %v2513_v59  ;;  %v586_v26 = vadd.f32 %v2515_v41, %v396_v60 }
 0x127   :  { %v1025_v48 = vpack.c.bf16 %v1011_v19, %v1009_v32  ;;  %v970_v29 = vadd.f32 %v939_v25, %v784_v54  ;;  %v997_v47 = vadd.f32 %v2403_v0, %v969_v21  ;;  %v1012_v14 = vmax.f32 %v996_v10, 0.0  ;;  %v775_v9 = vpop.f32.mrf.mxu1 }
 0x128   :  { %v941_v30 = vpop.f32.mrf.mxu0  ;;  %v791_v21 = vadd.f32 %v771_v35, %v587_v56  ;;  %v589_v20 = vadd.f32 %v2396_v28, %v402_v55  ;;  %v790_v7 = vadd.f32 %v769_v45, %v586_v26 }
 0x129   :  { %v998_v49 = vadd.f32 %v2407_v51, %v970_v29  ;;  %v971_v34 = vadd.f32 %v941_v30, %v785_v39  ;;  %1682 = vmatprep.mubr.msk.bf16.mxu1 %vm1116_vm6, %v1025_v48  ;;  %1697 = vmatprep.mubr.msk.bf16.mxu0 %vm1116_vm6, %v1025_v48  ;;  %v1013_v63 = vmax.f32 %v997_v47, 0.0  ;;  %v792_v39 = vadd.f32 %v773_v42, %v588_v53 }
 0x12a   :  { %v945_v16 = vpop.f32.mrf.mxu0  ;;  %1166 = vmatmul.mubr.bf16.vlgmr.msra.gmra.mxu1 %v1024_v46  ;;  %1318 = vmatmul.mubr.bf16.vlgmr.msra.gmra.mxu0 %v1024_v46  ;;  %v793_v46 = vadd.f32 %v775_v9, %v589_v20 }
 0x12b   :  { %v999_v8 = vadd.f32 %v2403_v0, %v971_v34  ;;  %v1014_v36 = vmax.f32 %v998_v49, 0.0  ;;  %v972_v37 = vadd.f32 %v945_v16, %v786_v62 }
 0x12c   :  { %v947_v61 = vpop.f32.mrf.mxu0 }
 0x12d   :  { %v1015_v3 = vmax.f32 %v999_v8, 0.0  ;;  %v973_v15 = vadd.f32 %v947_v61, %v787_v50  ;;  %v1026_v6 = vpack.c.bf16 %v1014_v36, %v1012_v14  ;;  %v1000_v17 = vadd.f32 %v2407_v51, %v972_v37 }
 0x12e   :  { %v949_v1 = vpop.f32.mrf.mxu0 }
 0x12f   :  { %v1027_v57 = vpack.c.bf16 %v1015_v3, %v1013_v63  ;;  %v974_v27 = vadd.f32 %v949_v1, %v788_v2  ;;  %v1001_v54 = vadd.f32 %v2403_v0, %v973_v15  ;;  %v1016_v12 = vmax.f32 %v1000_v17, 0.0 }
 0x130   :  { %v951_v5 = vpop.f32.mrf.mxu0 }
 0x131   :  { %v1002_v32 = vadd.f32 %v2407_v51, %v974_v27  ;;  %v975_v19 = vadd.f32 %v951_v5, %v789_v58  ;;  %1683 = vmatprep.mubr.msk.bf16.mxu1 %vm1116_vm6, %v1027_v57  ;;  %1698 = vmatprep.mubr.msk.bf16.mxu0 %vm1116_vm6, %v1027_v57  ;;  %v1017_v43 = vmax.f32 %v1001_v54, 0.0 }
 0x132   :  { %v955_v44 = vpop.f32.mrf.mxu0  ;;  %1174 = vmatmul.mubr.bf16.gmra.mxu1 %v1026_v6  ;;  %1326 = vmatmul.mubr.bf16.gmra.mxu0 %v1026_v6 }
 0x133   :  { %v1003_v22 = vadd.f32 %v2403_v0, %v975_v19  ;;  %v1018_v23 = vmax.f32 %v1002_v32, 0.0  ;;  %v976_v31 = vadd.f32 %v955_v44, %v790_v7 }
 0x134   :  { %v957_v25 = vpop.f32.mrf.mxu0 }
 0x135   :  { %v1019_v48 = vmax.f32 %v1003_v22, 0.0  ;;  %v977_v29 = vadd.f32 %v957_v25, %v791_v21  ;;  %v1028_v34 = vpack.c.bf16 %v1018_v23, %v1016_v12  ;;  %v1004_v16 = vadd.f32 %v2407_v51, %v976_v31  ;;  %v1877_v31 = vld [vmem:[%s2499_s5 + $0x8] sm:$0x3f]  }
 0x136   :  { %v959_v24 = vpop.f32.mrf.mxu0 }
 0x137   :  { %v1029_v30 = vpack.c.bf16 %v1019_v48, %v1017_v43  ;;  %v978_v47 = vadd.f32 %v959_v24, %v792_v39  ;;  %v1005_v28 = vadd.f32 %v2403_v0, %v977_v29  ;;  %v1020_v62 = vmax.f32 %v1004_v16, 0.0  ;;  %v1878_v24 = vld [vmem:[%s2500_s6] sm:$0xff]  }
 0x138   :  { %v961_v49 = vpop.f32.mrf.mxu0 }
 0x139   :  { %v1006_v10 = vadd.f32 %v2407_v51, %v978_v47  ;;  %v979_v45 = vadd.f32 %v961_v49, %v793_v46  ;;  %1684 = vmatprep.mubr.msk.bf16.mxu1 %vm1116_vm6, %v1029_v30  ;;  %1699 = vmatprep.mubr.msk.bf16.mxu0 %vm1116_vm6, %v1029_v30  ;;  %v1021_v8 = vmax.f32 %v1005_v28, 0.0  ;;  %v1876_v51 = vld [vmem:[%s2499_s5] sm:$0xff]   ;;  %v1879_v46 = vld [vmem:[%s2500_s6 + $0x8] sm:$0x3f]  }
 0x13a   :  { %1182 = vmatmul.mubr.bf16.gmra.mxu1 %v1028_v34  ;;  %1334 = vmatmul.mubr.bf16.gmra.mxu0 %v1028_v34 }
 0x13b   :  { %v1007_v50 = vadd.f32 %v2403_v0, %v979_v45  ;;  %v1022_v52 = vmax.f32 %v1006_v10, 0.0 }
 0x13d   :  { %v1023_v11 = vmax.f32 %v1007_v50, 0.0  ;;  %v1030_v36 = vpack.c.bf16 %v1022_v52, %v1020_v62 }
 0x13f   :  { %v1031_v35 = vpack.c.bf16 %v1023_v11, %v1021_v8 }
 0x141   :  { %1685 = vmatprep.mubr.msk.bf16.mxu1 %vm1116_vm6, %v1031_v35  ;;  %1700 = vmatprep.mubr.msk.bf16.mxu0 %vm1116_vm6, %v1031_v35 }
 0x142   :  { %1190 = vmatmul.mubr.bf16.gmra.mxu1 %v1030_v36  ;;  %1342 = vmatmul.mubr.bf16.gmra.mxu0 %v1030_v36 }
 0x143   :  { %1737 = vmatprep.mubr.msk.bf16.mxu1 %vm1376_vm7, %v1876_v51 }
 0x1ea   :  { %v1167_v0 = vpop.f32.mrf.mxu1  ;;  %v1319_v61 = vpop.f32.mrf.mxu0 }
 0x1eb   :  { %v1350_v29 = vmax.f32 %v1167_v0, %v1319_v61 }
 0x1ec   :  { %v1169_v2 = vpop.f32.mrf.mxu1  ;;  %v1321_v63 = vpop.f32.mrf.mxu0 }
 0x1ee   :  { %v1170_v3 = vpop.f32.mrf.mxu1  ;;  %v1322_v15 = vpop.f32.mrf.mxu0 }
 0x1ef   :  { %v1351_v43 = vmax.f32 %v1170_v3, %v1322_v15 }
 0x1f0   :  { %v1172_v38 = vpop.f32.mrf.mxu1  ;;  %v1324_v40 = vpop.f32.mrf.mxu0 }
 0x1f1   :  { %v1358_v12 = vpack.c.bf16 %v1351_v43, %v1350_v29 }
 0x1f2   :  { %v1175_v60 = vpop.f32.mrf.mxu1  ;;  %v1327_v33 = vpop.f32.mrf.mxu0 }
 0x1f3   :  { %v1352_v39 = vmax.f32 %v1175_v60, %v1327_v33 }
 0x1f4   :  { %v1177_v4 = vpop.f32.mrf.mxu1  ;;  %v1329_v13 = vpop.f32.mrf.mxu0 }
 0x1f6   :  { %v1178_v14 = vpop.f32.mrf.mxu1  ;;  %v1330_v37 = vpop.f32.mrf.mxu0 }
 0x1f7   :  { %v1353_v9 = vmax.f32 %v1178_v14, %v1330_v37 }
 0x1f8   :  { %v1180_v1 = vpop.f32.mrf.mxu1  ;;  %v1332_v58 = vpop.f32.mrf.mxu0 }
 0x1f9   :  { %v1359_v48 = vpack.c.bf16 %v1353_v9, %v1352_v39 }
 0x1fa   :  { %v1183_v56 = vpop.f32.mrf.mxu1  ;;  %v1335_v57 = vpop.f32.mrf.mxu0 }
 0x1fb   :  { %v1354_v22 = vmax.f32 %v1183_v56, %v1335_v57 }
 0x1fc   :  { %v1185_v27 = vpop.f32.mrf.mxu1  ;;  %v1337_v59 = vpop.f32.mrf.mxu0 }
 0x1fe   :  { %v1186_v18 = vpop.f32.mrf.mxu1  ;;  %v1338_v55 = vpop.f32.mrf.mxu0 }
 0x1ff   :  { %v1355_v19 = vmax.f32 %v1186_v18, %v1338_v55 }
 0x200   :  { %v1188_v41 = vpop.f32.mrf.mxu1  ;;  %v1340_v26 = vpop.f32.mrf.mxu0 }
 0x201   :  { %v1360_v23 = vpack.c.bf16 %v1355_v19, %v1354_v22 }
 0x202   :  { %v1191_v53 = vpop.f32.mrf.mxu1  ;;  %v1343_v42 = vpop.f32.mrf.mxu0 }
 0x203   :  { %v1356_v17 = vmax.f32 %v1191_v53, %v1343_v42 }
 0x204   :  { %v1193_v5 = vpop.f32.mrf.mxu1  ;;  %v1345_v6 = vpop.f32.mrf.mxu0 }
 0x206   :  { %v1194_v54 = vpop.f32.mrf.mxu1  ;;  %v1346_v32 = vpop.f32.mrf.mxu0 }
 0x207   :  { %v1357_v44 = vmax.f32 %v1194_v54, %v1346_v32 }
 0x208   :  { %v1196_v21 = vpop.f32.mrf.mxu1  ;;  %v1348_v20 = vpop.f32.mrf.mxu0 }
 0x209   :  { %v1361_v7 = vpack.c.bf16 %v1357_v44, %v1356_v17 }
 0x20b   :  { %1753 = vmatprep.subr.msk.bf16.mxu1 %vm811_vm2, %v1361_v7  ;;  %v1385_v25 = vsel %vm811_vm2, %v1361_v7, 0 }
 0x20c   :  { %1730 = vmatpush3.bf16.msra.mxu1 %v1385_v25 }
 0x20d   :  { %1731 = vmatprep.subr.bf16.mxu1 %v1360_v23 }
 0x210   :  { %1732 = vmatpush3.bf16.msra.mxu1 %v1360_v23 }
 0x211   :  { %1733 = vmatprep.subr.bf16.mxu1 %v1359_v48 }
 0x214   :  { %1734 = vmatpush3.bf16.msra.mxu1 %v1359_v48 }
 0x215   :  { %1735 = vmatprep.subr.bf16.mxu1 %v1358_v12 }
 0x218   :  { %1736 = vmatpush3.bf16.msra.mxu1 %v1358_v12 }
 0x219   :  { %1754 = vmatprep.subr.msk.bf16.mxu1 %vm811_vm2, %v1361_v7 }
 0x21b   :  { %1738 = vmatmul.mubr.msk.bf16.vlgmr.msra.gmra.mxu1 %vm1376_vm7, %v1877_v31 }
 0x21c   :  { %1742 = vmatpush3.bf16.msra.mxu1 %v1385_v25  ;;  %1749 = vmatprep.mubr.msk.bf16.mxu1 %vm1376_vm7, %v1878_v24 }
 0x21d   :  { %1743 = vmatprep.subr.bf16.mxu1 %v1360_v23 }
 0x220   :  { %1744 = vmatpush3.bf16.msra.mxu1 %v1360_v23 }
 0x221   :  { %1745 = vmatprep.subr.bf16.mxu1 %v1359_v48 }
 0x224   :  { %1746 = vmatpush3.bf16.msra.mxu1 %v1359_v48 }
 0x225   :  { %1747 = vmatprep.subr.bf16.mxu1 %v1358_v12 }
 0x228   :  { %1748 = vmatpush3.bf16.msra.mxu1 %v1358_v12 }
 0x22b   :  { %1750 = vmatmul.mubr.msk.bf16.vlgmr.msra.gmra.mxu1 %vm1376_vm7, %v1879_v46 }
 0x2db   :  { %v1739_v30 = vpop.f32.mrf.mxu1 }
 0x2dd   :  { %v1421_v47 = vpop.f32.mrf.mxu1 }
 0x2df   :  { %v1740_v49 = vpop.f32.mrf.mxu1 }
 0x2e1   :  { %v1424_v34 = vpop.f32.mrf.mxu1 }
 0x2eb   :  { %v1751_v28 = vpop.f32.mrf.mxu1 }
 0x2ec   :  { %v1507_v10 = vmax.f32 %v1739_v30, %v1751_v28 }
 0x2ed   :  { %v1490_v45 = vpop.f32.mrf.mxu1 }
 0x2ee   :  { %v1715_v16 = vpack.c.bf16 %v1507_v10, %v1507_v10  ;;  %v1505_v50 = vmax.f32 %v1421_v47, %v1490_v45 }
 0x2ef   :  { %v1752_v52 = vpop.f32.mrf.mxu1 }
 0x2f0   :  { %1528 = vst.msk [vmem:[%s2501_s7 + $0x8] sm:$0xf] %vm1525_vm8, %v1715_v16  ;;  %v1713_v8 = vpack.c.bf16 %v1505_v50, %v1505_v50  ;;  %v1508_v11 = vmax.f32 %v1740_v49, %v1752_v52 }
 0x2f1   :  { %v1493_v62 = vpop.f32.mrf.mxu1 }
 0x2f2   :  { %1526 = vst.msk [vmem:[%s2501_s7] sm:$0xf] %vm1525_vm8, %v1713_v8  ;;  %v1716_v35 = vpack.c.bf16 %v1508_v11, %v1508_v11  ;;  %v1506_v36 = vmax.f32 %v1424_v34, %v1493_v62 }
 0x2f4   :  { %1530 = vst.msk [vmem:[%s2501_s7 + $0xc] sm:$0x3] %vm1529_vm9, %v1716_v35  ;;  %v1714_v51 = vpack.c.bf16 %v1506_v36, %v1506_v36 }
 0x2f6   :  { %1527 = vst.msk [vmem:[%s2501_s7 + $0x4] sm:$0xf] %vm1525_vm8, %v1714_v51 }

// kernel: net_forward.4
= control target key start
LH: loop header
LB: loop body
LE: loop exit
PB: predicated region body
PF: predicated region fallthrough
CT: control target
= control target key end

     0   :  { %vm142_vm0 = vcmask 1041408   ;;  %v1480_v2 = vmov 0   ;;  %vm64_vm1 = vsmask.f32 7424  ;;  %vm135_vm2 = vcmask 687104   ;;  %s1857_s1 = inlined_call_operand.vmem [shape: bf16[5,84,160], index: 1, kind: input, shape index: {}]   ;;  %s1858_s0 = inlined_call_operand.vmem [shape: bf16[1,28,84], index: 0, kind: input, shape index: {}]   ;;  %s1859_s3 = inlined_call_operand.vmem [shape: bf16[160,80], index: 3, kind: input, shape index: {}]   ;;  %s1860_s4 = inlined_call_operand.vmem [shape: bf16[160,80], index: 4, kind: input, shape index: {}]   ;;  %s1861_s2 = inlined_call_operand.vmem [shape: f32[1,160], index: 2, kind: input, shape index: {}]   ;;  %s1862_s5 = inlined_call_operand.vmem [shape: bf16[10,24], index: 5, kind: input, shape index: {}]   ;;  %s1863_s6 = inlined_call_operand.vmem [shape: bf16[10,24], index: 6, kind: input, shape index: {}]   ;;  %s1864_s7 = inlined_call_operand.vmem [shape: bf16[1,10,80], index: 7, kind: output, shape index: {}]  }
   0x1   :  { %v1195_v0 = vld [vmem:[%s1857_s1 + $0xa8] sm:$0x33]  ;;  %v40_v1 = vld [vmem:[%s1857_s1 + $0x50] sm:$0x33]  ;;  %181 = vmatprep.mubr.bf16.mxu0 %v1480_v2  ;;  %299 = vmatprep.mubr.bf16.mxu1 %v1480_v2  ;;  %v1371_v7 = vld [vmem:[%s1857_s1 + $0x9c] ss:$8 sps:$4 sm:$0xff]  }
   0x2   :  { %v1209_v3 = vcombine.high %v1195_v0, %v1195_v0  ;;  %v1225_v4 = vcombine.high %v40_v1, %v40_v1  ;;  %v1208_v5 = vcombine.low %v1195_v0, %v1195_v0  ;;  %v1224_v6 = vcombine.low %v40_v1, %v40_v1  ;;  %v1373_v8 = vld [vmem:[%s1857_s1 + $0x44] ss:$8 sps:$4 sm:$0xff]   ;;  %v1375_v11 = vld [vmem:[%s1857_s1 + $0x98] ss:$8 sps:$4 sm:$0xff]   ;;  %v1379_v14 = vld [vmem:[%s1857_s1 + $0x34] ss:$8 sps:$4 sm:$0xff]  }
   0x3   :  { %v1376_v12 = vld [vmem:[%s1857_s1 + $0x40] ss:$8 sps:$4 sm:$0xff]   ;;  %v1377_v13 = vld [vmem:[%s1857_s1 + $0x8c] ss:$8 sps:$4 sm:$0xff]   ;;  %v1382_v16 = vld [vmem:[%s1857_s1 + $0x30] ss:$8 sps:$4 sm:$0xff]  }
   0x4   :  { %1210 = vmatprep.subr.msk.bf16.mxu0 %vm142_vm0, %v1209_v3  ;;  %1226 = vmatprep.subr.msk.bf16.mxu1 %vm142_vm0, %v1225_v4  ;;  %v144_v9 = vsel %vm142_vm0, %v1208_v5, 0  ;;  %v262_v10 = vsel %vm142_vm0, %v1224_v6, 0  ;;  %v1381_v15 = vld [vmem:[%s1857_s1 + $0x88] ss:$8 sps:$4 sm:$0xff]   ;;  %v1383_v17 = vld [vmem:[%s1857_s1 + $0x7c] ss:$8 sps:$4 sm:$0xff]  }
   0x5   :  { %154 = vmatpush1.bf16.msra.mxu0 %v144_v9  ;;  %272 = vmatpush1.bf16.msra.mxu1 %v262_v10  ;;  %v1385_v18 = vld [vmem:[%s1857_s1 + $0x24] ss:$8 sps:$4 sm:$0xff]   ;;  %v1387_v19 = vld [vmem:[%s1857_s1 + $0x78] ss:$8 sps:$4 sm:$0xff]   ;;  %v1391_v22 = vld [vmem:[%s1857_s1 + $0x14] ss:$8 sps:$4 sm:$0xff]  }
   0x6   :  { %155 = vmatprep.subr.bf16.mxu0 %v1371_v7  ;;  %273 = vmatprep.subr.bf16.mxu1 %v1373_v8  ;;  %v1388_v20 = vld [vmem:[%s1857_s1 + $0x20] ss:$8 sps:$4 sm:$0xff]   ;;  %v1389_v21 = vld [vmem:[%s1857_s1 + $0x6c] ss:$8 sps:$4 sm:$0xff]   ;;  %v1583_v24 = vld [vmem:[%s1858_s0 + $0x4] sm:$0xf] }
   0x7   :  { %v27_v23 = vld [vmem:[%s1858_s0] sm:$0xf]  ;;  %v1588_v25 = vld [vmem:[%s1858_s0 + $0x8] sm:$0xf]  ;;  %v1394_v27 = vld [vmem:[%s1857_s1 + $0x10] ss:$8 sps:$4 sm:$0xff]  }
   0x8   :  { %v1393_v26 = vld [vmem:[%s1857_s1 + $0x68] ss:$8 sps:$4 sm:$0xff]   ;;  %v41_v28 = vld [vmem:[%s1858_s0 + $0xc] sm:$0x1]  ;;  %v1196_v29 = vcombine.low %v27_v23, %v1583_v24  ;;  %v1395_v30 = vld [vmem:[%s1857_s1 + $0x5c] ss:$8 sps:$4 sm:$0xff]   ;;  %v1213_v62 = vcombine.low %v1588_v25, %v1588_v25 }
   0x9   :  { %156 = vmatpush1.bf16.msra.mxu0 %v1375_v11  ;;  %274 = vmatpush1.bf16.msra.mxu1 %v1376_v12  ;;  %v1604_v31 = vcombine.low %v1588_v25, %v41_v28  ;;  %v1397_v32 = vld [vmem:[%s1857_s1 + $0x4] ss:$8 sps:$4 sm:$0xff]   ;;  %v1266_v37 = vld [vmem:[%s1857_s1 + $0x158] sm:$0x33]  ;;  %v1400_v40 = vld [vmem:[%s1857_s1] ss:$8 sps:$4 sm:$0xff]  }
   0xa   :  { %157 = vmatprep.subr.bf16.mxu0 %v1377_v13  ;;  %275 = vmatprep.subr.bf16.mxu1 %v1379_v14  ;;  %v66_v33 = vshrl.u32 %v1196_v29, 16  ;;  %v68_v34 = vshll.u32 %v1196_v29, 16  ;;  %v1239_v35 = vld [vmem:[%s1857_s1 + $0x100] sm:$0x33]  ;;  %v1279_v45 = vcombine.high %v1266_v37, %v1266_v37  ;;  %v1278_v46 = vcombine.low %v1266_v37, %v1266_v37  ;;  %v1410_v48 = vld [vmem:[%s1857_s1 + $0xf4] ss:$8 sps:$4 sm:$0xff]  }
   0xb   :  { %v73_v36 = vshll.u32 %v1604_v31, 16  ;;  %v1399_v39 = vld [vmem:[%s1857_s1 + $0x58] ss:$8 sps:$4 sm:$0xff]   ;;  %v1252_v42 = vcombine.high %v1239_v35, %v1239_v35  ;;  %v1251_v43 = vcombine.low %v1239_v35, %v1239_v35  ;;  %v1413_v51 = vld [vmem:[%s1857_s1 + $0x14c] ss:$8 sps:$4 sm:$0xff]   ;;  %v77_v54 = vshrl.u32 %v1604_v31, 16 }
   0xc   :  { %v70_v38 = vrot.slane %v68_v34, 1  ;;  %v558_v50 = vsel %vm142_vm0, %v1278_v46, 0  ;;  %v462_v52 = vld [vmem:[%s1858_s0 + $0xc] sm:$0x3]  ;;  %v1408_v53 = vld [vmem:[%s1857_s1 + $0xf0] ss:$8 sps:$4 sm:$0xff]  }
   0xd   :  { %158 = vmatpush1.bf16.msra.mxu0 %v1381_v15  ;;  %276 = vmatpush1.bf16.msra.mxu1 %v1382_v16  ;;  %v75_v41 = vrot.slane %v73_v36, 1  ;;  %v400_v49 = vsel %vm142_vm0, %v1251_v43, 0  ;;  %v1411_v55 = vld [vmem:[%s1857_s1 + $0x148] ss:$8 sps:$4 sm:$0xff]   ;;  %v1416_v56 = vld [vmem:[%s1857_s1 + $0xe4] ss:$8 sps:$4 sm:$0xff]   ;;  %v1656_v59 = vcombine.low %v1588_v25, %v462_v52 }
   0xe   :  { %159 = vmatprep.subr.bf16.mxu0 %v1383_v17  ;;  %277 = vmatprep.subr.bf16.mxu1 %v1385_v18  ;;  %v71_v44 = vor.u32 %v70_v38, %v66_v33  ;;  %v1419_v57 = vld [vmem:[%s1857_s1 + $0x13c] ss:$8 sps:$4 sm:$0xff]   ;;  %v318_v58 = vld [vmem:[%s1858_s0] sm:$0xe]  ;;  %v1425_v3 = vld [vmem:[%s1857_s1 + $0x12c] ss:$8 sps:$4 sm:$0xff]  }
   0xf   :  { %v1414_v60 = vld [vmem:[%s1857_s1 + $0xe0] ss:$8 sps:$4 sm:$0xff]   ;;  %v79_v61 = vor.u32 %v77_v54, %v75_v41  ;;  %v1240_v0 = vcombine.low %v318_v58, %v1583_v24  ;;  %v1422_v1 = vld [vmem:[%s1857_s1 + $0xd4] ss:$8 sps:$4 sm:$0xff]   ;;  %v1420_v4 = vld [vmem:[%s1857_s1 + $0xd0] ss:$8 sps:$4 sm:$0xff]  }
  0x10   :  { %v76_v47 = vsel %vm64_vm1, %v71_v44, %v75_v41  ;;  %v1417_v63 = vld [vmem:[%s1857_s1 + $0x138] ss:$8 sps:$4 sm:$0xff]   ;;  %v1423_v5 = vld [vmem:[%s1857_s1 + $0x128] ss:$8 sps:$4 sm:$0xff]   ;;  %v488_v6 = vshrl.u32 %v1656_v59, 16  ;;  %v491_v7 = vshll.u32 %v1656_v59, 16 }
  0x11   :  { %160 = vmatpush1.bf16.msra.mxu0 %v1387_v19  ;;  %278 = vmatpush1.bf16.msra.mxu1 %v1388_v20  ;;  %v1429_v8 = vld [vmem:[%s1857_s1 + $0xc4] ss:$8 sps:$4 sm:$0xff]   ;;  %v480_v9 = vshrl.u32 %v1240_v0, 16  ;;  %v483_v10 = vshll.u32 %v1240_v0, 16  ;;  %v1427_v14 = vld [vmem:[%s1857_s1 + $0xc0] ss:$8 sps:$4 sm:$0xff]  }
  0x12   :  { %161 = vmatprep.subr.bf16.mxu0 %v1389_v21  ;;  %279 = vmatprep.subr.bf16.mxu1 %v1391_v22  ;;  %v1432_v11 = vld [vmem:[%s1857_s1 + $0x11c] ss:$8 sps:$4 sm:$0xff]   ;;  %v490_v12 = vrot.slane %v488_v6, 1  ;;  %v493_v13 = vrot.slane %v491_v7, 2  ;;  %v1430_v15 = vld [vmem:[%s1857_s1 + $0x118] ss:$8 sps:$4 sm:$0xff]  }
  0x13   :  { %v482_v16 = vrot.slane %v480_v9, 1  ;;  %v485_v17 = vrot.slane %v483_v10, 2  ;;  %v1435_v18 = vld [vmem:[%s1857_s1 + $0xb4] ss:$8 sps:$4 sm:$0xff]   ;;  %v1433_v21 = vld [vmem:[%s1857_s1 + $0xb0] ss:$8 sps:$4 sm:$0xff]  }
  0x14   :  { %v1438_v19 = vld [vmem:[%s1857_s1 + $0x10c] ss:$8 sps:$4 sm:$0xff]   ;;  %v1436_v22 = vld [vmem:[%s1857_s1 + $0x108] ss:$8 sps:$4 sm:$0xff]   ;;  %v335_v23 = vrot.slane %v1240_v0, 1  ;;  %v336_v25 = vrot.slane %v1604_v31, 1 }
  0x15   :  { %162 = vmatpush1.bf16.msra.mxu0 %v1393_v26  ;;  %280 = vmatpush1.bf16.msra.mxu1 %v1394_v27  ;;  %v1293_v20 = vld [vmem:[%s1857_s1 + $0x1b0] sm:$0x33]  ;;  %v486_v26 = vor.u32 %v485_v17, %v482_v16  ;;  %v494_v27 = vor.u32 %v493_v13, %v490_v12  ;;  %vm334_vm3 = vcmask 1046528   ;;  %vm478_vm4 = vsmask.f32 6400  ;;  %v1463_v52 = vld [vmem:[%s1860_s4 + $0x28] sm:$0xff]  }
  0x16   :  { %163 = vmatprep.subr.bf16.mxu0 %v1395_v30  ;;  %281 = vmatprep.subr.bf16.mxu1 %v1397_v32  ;;  %v1306_v28 = vcombine.high %v1293_v20, %v1293_v20  ;;  %v337_v30 = vsel %vm334_vm3, %v335_v23, %v336_v25  ;;  %v1444_v31 = vld [vmem:[%s1857_s1 + $0x1a4] ss:$8 sps:$4 sm:$0xff]   ;;  %v1442_v34 = vld [vmem:[%s1857_s1 + $0x1a0] ss:$8 sps:$4 sm:$0xff]   ;;  %v1447_v35 = vld [vmem:[%s1857_s1 + $0x194] ss:$8 sps:$4 sm:$0xff]  }
  0x17   :  { %v495_v32 = vsel %vm478_vm4, %v486_v26, %v494_v27  ;;  %v1445_v36 = vld [vmem:[%s1857_s1 + $0x190] ss:$8 sps:$4 sm:$0xff]   ;;  %v1450_v37 = vld [vmem:[%s1857_s1 + $0x184] ss:$8 sps:$4 sm:$0xff]   ;;  %v1448_v38 = vld [vmem:[%s1857_s1 + $0x180] ss:$8 sps:$4 sm:$0xff]  }
  0x18   :  { %v1451_v41 = vld [vmem:[%s1857_s1 + $0x170] ss:$8 sps:$4 sm:$0xff]   ;;  %v1456_v43 = vld [vmem:[%s1857_s1 + $0x164] ss:$8 sps:$4 sm:$0xff]   ;;  %v1454_v44 = vld [vmem:[%s1857_s1 + $0x160] ss:$8 sps:$4 sm:$0xff]  }
  0x19   :  { %164 = vmatpush1.bf16.msra.mxu0 %v1399_v39  ;;  %282 = vmatpush1.bf16.msra.mxu1 %v1400_v40  ;;  %v1453_v39 = vld [vmem:[%s1857_s1 + $0x174] ss:$8 sps:$4 sm:$0xff]   ;;  %v620_v40 = vld [vmem:[%s1858_s0] sm:$0xc]  ;;  %v638_v46 = vrot.slane %v1656_v59, 2  ;;  %vm636_vm5 = vcmask 1045504  }
  0x1a   :  { %1253 = vmatprep.subr.msk.bf16.mxu0 %vm142_vm0, %v1252_v42  ;;  %1280 = vmatprep.subr.msk.bf16.mxu1 %vm142_vm0, %v1279_v45  ;;  %v1294_v42 = vcombine.low %v620_v40, %v1583_v24  ;;  %v1458_v24 = vld [vmem:[%s1859_s3 + $0x38] sm:$0xff]   ;;  %v1465_v54 = vld [vmem:[%s1860_s4 + $0x20] sm:$0xff]   ;;  %v1469_v58 = vld [vmem:[%s1860_s4 + $0x10] sm:$0xff]   ;;  %vm872_vm6 = vcmask 261120   ;;  %vm1482_vm7 = vmmov 0   ;;  %vm1071_vm8 = vcmask 1043456  }
  0x1b   :  { %v1470_v59 = vld [vmem:[%s1859_s3 + $0x8] sm:$0xff]   ;;  %vm1067_vm9 = vcmask 195584   ;;  %vm1177_vm10 = vcmask 650240   ;;  %vm1179_vm11 = vcmask 647168  }
  0x1c   :  { %1211 = vmatmul.mubr.msk.bf16.vlgmr.msra.gmra.mxu0 %vm135_vm2, %v76_v47  ;;  %1227 = vmatmul.mubr.msk.bf16.vlgmr.msra.gmra.mxu1 %vm135_vm2, %v1196_v29  ;;  %v1305_v29 = vcombine.low %v1293_v20, %v1293_v20  ;;  %v637_v45 = vrot.slane %v1294_v42, 2  ;;  %v1475_v0 = vld [vmem:[%s1860_s4 + $0x48] sm:$0xff]  }
  0x1d   :  { %410 = vmatpush1.bf16.msra.mxu0 %v400_v49  ;;  %568 = vmatpush1.bf16.msra.mxu1 %v558_v50  ;;  %v1460_v49 = vld [vmem:[%s1859_s3 + $0x30] sm:$0xff]  }
  0x1e   :  { %411 = vmatprep.subr.bf16.mxu0 %v1410_v48  ;;  %569 = vmatprep.subr.bf16.mxu1 %v1413_v51  ;;  %v702_v33 = vsel %vm142_vm0, %v1305_v29, 0  ;;  %v639_v47 = vsel %vm636_vm5, %v637_v45, %v638_v46  ;;  %v1459_v48 = vld [vmem:[%s1860_s4 + $0x38] sm:$0xff]   ;;  %v1461_v50 = vld [vmem:[%s1860_s4 + $0x30] sm:$0xff]   ;;  %v1462_v51 = vld [vmem:[%s1859_s3 + $0x28] sm:$0xff]  }
  0x1f   :  { %191 = vmatprep.mubr.bf16.mxu0 %v1480_v2  ;;  %309 = vmatprep.mubr.bf16.mxu1 %v1480_v2 }
  0x21   :  { %412 = vmatpush1.bf16.msra.mxu0 %v1408_v53  ;;  %570 = vmatpush1.bf16.msra.mxu1 %v1411_v55  ;;  %v1464_v53 = vld [vmem:[%s1859_s3 + $0x20] sm:$0xff]   ;;  %v1466_v55 = vld [vmem:[%s1859_s3 + $0x18] sm:$0xff]  }
  0x22   :  { %413 = vmatprep.subr.bf16.mxu0 %v1416_v56  ;;  %571 = vmatprep.subr.bf16.mxu1 %v1419_v57  ;;  %v1467_v56 = vld [vmem:[%s1860_s4 + $0x18] sm:$0xff]   ;;  %v1468_v57 = vld [vmem:[%s1859_s3 + $0x10] sm:$0xff]  }
  0x24   :  { %1212 = vmatmul.mubr.msk.bf16.gmra.mxu0 %vm135_vm2, %v79_v61  ;;  %1228 = vmatmul.mubr.msk.bf16.gmra.mxu1 %vm135_vm2, %v1213_v62  ;;  %v1472_v61 = vld [vmem:[%s1859_s3] sm:$0xff]  }
  0x25   :  { %414 = vmatpush1.bf16.msra.mxu0 %v1414_v60  ;;  %572 = vmatpush1.bf16.msra.mxu1 %v1417_v63  ;;  %v1471_v60 = vld [vmem:[%s1860_s4 + $0x8] sm:$0xff]   ;;  %v1473_v62 = vld [vmem:[%s1860_s4] sm:$0xff]  }
  0x26   :  { %415 = vmatprep.subr.bf16.mxu0 %v1422_v1  ;;  %573 = vmatprep.subr.bf16.mxu1 %v1425_v3  ;;  %v1474_v63 = vld [vmem:[%s1859_s3 + $0x48] sm:$0xff]   ;;  %v1476_v1 = vld [vmem:[%s1859_s3 + $0x40] sm:$0xff]  }
  0x27   :  { %437 = vmatprep.mubr.bf16.mxu0 %v1480_v2  ;;  %595 = vmatprep.mubr.bf16.mxu1 %v1480_v2  ;;  %v1477_v3 = vld [vmem:[%s1860_s4 + $0x40] sm:$0xff]  }
  0x29   :  { %416 = vmatpush1.bf16.msra.mxu0 %v1420_v4  ;;  %574 = vmatpush1.bf16.msra.mxu1 %v1423_v5 }
  0x2a   :  { %417 = vmatprep.subr.bf16.mxu0 %v1429_v8  ;;  %575 = vmatprep.subr.bf16.mxu1 %v1432_v11 }
  0x2d   :  { %418 = vmatpush1.bf16.msra.mxu0 %v1427_v14  ;;  %576 = vmatpush1.bf16.msra.mxu1 %v1430_v15 }
  0x2e   :  { %419 = vmatprep.subr.bf16.mxu0 %v1435_v18  ;;  %577 = vmatprep.subr.bf16.mxu1 %v1438_v19 }
  0x31   :  { %420 = vmatpush1.bf16.msra.mxu0 %v1433_v21  ;;  %578 = vmatpush1.bf16.msra.mxu1 %v1436_v22 }
  0x32   :  { %1307 = vmatprep.subr.msk.bf16.mxu0 %vm142_vm0, %v1306_v28  ;;  %879 = vmatprep.subr.bf16.mxu1 %v1480_v2 }
  0x34   :  { %1254 = vmatmul.mubr.msk.bf16.vlgmr.msra.gmra.mxu0 %vm135_vm2, %v337_v30  ;;  %1281 = vmatmul.mubr.msk.bf16.vlgmr.msra.gmra.mxu1 %vm135_vm2, %v495_v32 }
  0x35   :  { %712 = vmatpush1.bf16.msra.mxu0 %v702_v33  ;;  %447 = vmatprep.mubr.bf16.mxu0 %v1480_v2 }
  0x36   :  { %713 = vmatprep.subr.bf16.mxu0 %v1444_v31  ;;  %605 = vmatprep.mubr.bf16.mxu1 %v1480_v2 }
  0x37   :  { %880 = vmatpush1.bf16.msra.mxu1 %v1458_v24 }
  0x38   :  { %881 = vmatprep.subr.bf16.mxu1 %v1480_v2 }
  0x39   :  { %714 = vmatpush1.bf16.msra.mxu0 %v1442_v34 }
  0x3a   :  { %715 = vmatprep.subr.bf16.mxu0 %v1447_v35 }
  0x3b   :  { %882 = vmatpush1.bf16.msra.mxu1 %v1460_v49  ;;  %v764_v49 = vld [vmem:[%s1861_s2] sm:$0x3] }
  0x3c   :  { %1255 = vmatmul.mubr.msk.bf16.gmra.mxu0 %vm135_vm2, %v336_v25  ;;  %1282 = vmatmul.mubr.msk.bf16.gmra.mxu1 %vm135_vm2, %v494_v27 }
  0x3d   :  { %716 = vmatpush1.bf16.msra.mxu0 %v1445_v36  ;;  %739 = vmatprep.mubr.bf16.mxu0 %v1480_v2  ;;  %v766_v36 = vlaneseq }
  0x3e   :  { %717 = vmatprep.subr.bf16.mxu0 %v1450_v37  ;;  %883 = vmatprep.subr.bf16.mxu1 %v1480_v2 }
  0x3f   :  { %884 = vmatpush1.bf16.msra.mxu1 %v1462_v51 }
  0x40   :  { %885 = vmatprep.subr.bf16.mxu1 %v1480_v2 }
  0x41   :  { %718 = vmatpush1.bf16.msra.mxu0 %v1448_v38 }
  0x42   :  { %719 = vmatprep.subr.bf16.mxu0 %v1453_v39  ;;  %v767_v39 = vshrl.u32 %v766_v36, 7 }
  0x43   :  { %886 = vmatpush1.bf16.msra.mxu1 %v1464_v53 }
  0x44   :  { %887 = vmatprep.subr.bf16.mxu1 %v1480_v2  ;;  %v772_v45 = vsub.s32 1, %v767_v39 }
  0x45   :  { %720 = vmatpush1.bf16.msra.mxu0 %v1451_v41 }
  0x46   :  { %721 = vmatprep.subr.bf16.mxu0 %v1456_v43 }
  0x47   :  { %888 = vmatpush1.bf16.msra.mxu1 %v1466_v55 }
  0x48   :  { %889 = vmatprep.subr.bf16.mxu1 %v1480_v2 }
  0x49   :  { %722 = vmatpush1.bf16.msra.mxu0 %v1454_v44 }
  0x4a   :  { %1007 = vmatprep.subr.bf16.mxu0 %v1480_v2 }
  0x4b   :  { %890 = vmatpush1.bf16.msra.mxu1 %v1468_v57 }
  0x4c   :  { %1308 = vmatmul.mubr.msk.bf16.vlgmr.msra.gmra.mxu0 %vm135_vm2, %v639_v47  ;;  %891 = vmatprep.subr.bf16.mxu1 %v1480_v2  ;;  %v768_v47 = vsub.s32 0, %v767_v39 }
  0x4d   :  { %749 = vmatprep.mubr.bf16.mxu0 %v1480_v2  ;;  %1008 = vmatpush1.bf16.msra.mxu0 %v1459_v48 }
  0x4e   :  { %1009 = vmatprep.subr.bf16.mxu0 %v1480_v2 }
  0x4f   :  { %892 = vmatpush1.bf16.msra.mxu1 %v1470_v59  ;;  %v769_v59 = vrot.slane %v764_v49, %v768_v47 }
  0x50   :  { %893 = vmatprep.subr.bf16.mxu1 %v1480_v2 }
  0x51   :  { %1010 = vmatpush1.bf16.msra.mxu0 %v1461_v50 }
  0x52   :  { %1011 = vmatprep.subr.bf16.mxu0 %v1480_v2 }
  0x53   :  { %894 = vmatpush1.bf16.msra.mxu1 %v1472_v61 }
  0x54   :  { %1309 = vmatmul.mubr.msk.bf16.gmra.mxu0 %vm135_vm2, %v638_v46  ;;  %907 = vmatprep.subr.bf16.mxu1 %v1480_v2 }
  0x55   :  { %1012 = vmatpush1.bf16.msra.mxu0 %v1463_v52 }
  0x56   :  { %1013 = vmatprep.subr.bf16.mxu0 %v1480_v2 }
  0x57   :  { %908 = vmatpush2.bf16.msra.mxu1 %v1474_v63 }
  0x58   :  { %909 = vmatprep.subr.bf16.mxu1 %v1480_v2 }
  0x59   :  { %1014 = vmatpush1.bf16.msra.mxu0 %v1465_v54 }
  0x5a   :  { %1015 = vmatprep.subr.bf16.mxu0 %v1480_v2 }
  0x5b   :  { %910 = vmatpush2.bf16.msra.mxu1 %v1476_v1 }
  0x5d   :  { %1016 = vmatpush1.bf16.msra.mxu0 %v1467_v56  ;;  %v773_v56 = vrot.slane %v764_v49, %v772_v45  ;;  %v1478_v49 = vld [vmem:[%s1862_s5] sm:$0x1f]  }
  0x5e   :  { %1017 = vmatprep.subr.bf16.mxu0 %v1480_v2 }
  0x61   :  { %1018 = vmatpush1.bf16.msra.mxu0 %v1469_v58 }
  0x62   :  { %1019 = vmatprep.subr.bf16.mxu0 %v1480_v2 }
  0x65   :  { %1020 = vmatpush1.bf16.msra.mxu0 %v1471_v60 }
  0x66   :  { %1021 = vmatprep.subr.bf16.mxu0 %v1480_v2 }
  0x69   :  { %1022 = vmatpush1.bf16.msra.mxu0 %v1473_v62 }
  0x6a   :  { %1035 = vmatprep.subr.bf16.mxu0 %v1480_v2 }
  0x6d   :  { %1036 = vmatpush2.bf16.msra.mxu0 %v1475_v0 }
  0x6e   :  { %1037 = vmatprep.subr.bf16.mxu0 %v1480_v2 }
  0x71   :  { %1038 = vmatpush2.bf16.msra.mxu0 %v1477_v3 }
  0xdc   :  { %v183_v4 = vpop.f32.mrf.mxu0  ;;  %v301_v5 = vpop.f32.mrf.mxu1 }
  0xdd   :  { %v302_v38 = vadd.f32 %v301_v5, %v183_v4 }
  0xde   :  { %v185_v6 = vpop.f32.mrf.mxu0  ;;  %v303_v7 = vpop.f32.mrf.mxu1 }
  0xdf   :  { %v304_v37 = vadd.f32 %v303_v7, %v185_v6 }
  0xe0   :  { %v187_v8 = vpop.f32.mrf.mxu0  ;;  %v305_v9 = vpop.f32.mrf.mxu1 }
  0xe1   :  { %v306_v40 = vadd.f32 %v305_v9, %v187_v8 }
  0xe2   :  { %v189_v10 = vpop.f32.mrf.mxu0  ;;  %v307_v11 = vpop.f32.mrf.mxu1 }
  0xe3   :  { %v308_v43 = vadd.f32 %v307_v11, %v189_v10 }
  0xe4   :  { %v193_v12 = vpop.f32.mrf.mxu0  ;;  %v311_v2 = vpop.f32.mrf.mxu1 }
  0xe5   :  { %v312_v50 = vadd.f32 %v311_v2, %v193_v12 }
  0xe6   :  { %v195_v13 = vpop.f32.mrf.mxu0  ;;  %v313_v14 = vpop.f32.mrf.mxu1 }
  0xe7   :  { %v314_v53 = vadd.f32 %v313_v14, %v195_v13 }
  0xe8   :  { %v197_v15 = vpop.f32.mrf.mxu0  ;;  %v315_v16 = vpop.f32.mrf.mxu1 }
  0xea   :  { %v198_v17 = vpop.f32.mrf.mxu0  ;;  %v316_v18 = vpop.f32.mrf.mxu1 }
  0xf4   :  { %v439_v19 = vpop.f32.mrf.mxu0  ;;  %v597_v20 = vpop.f32.mrf.mxu1 }
  0xf5   :  { %v456_v42 = vadd.f32 %v439_v19, %v302_v38 }
  0xf6   :  { %v441_v21 = vpop.f32.mrf.mxu0  ;;  %v599_v22 = vpop.f32.mrf.mxu1 }
  0xf7   :  { %v457_v41 = vadd.f32 %v441_v21, %v304_v37  ;;  %v614_v51 = vadd.f32 %v597_v20, %v456_v42 }
  0xf8   :  { %v443_v23 = vpop.f32.mrf.mxu0  ;;  %v601_v25 = vpop.f32.mrf.mxu1 }
  0xf9   :  { %v458_v44 = vadd.f32 %v443_v23, %v306_v40  ;;  %v615_v24 = vadd.f32 %v599_v22, %v457_v41 }
  0xfa   :  { %v445_v26 = vpop.f32.mrf.mxu0  ;;  %v603_v27 = vpop.f32.mrf.mxu1 }
  0xfb   :  { %v459_v48 = vadd.f32 %v445_v26, %v308_v43  ;;  %v616_v54 = vadd.f32 %v601_v25, %v458_v44 }
  0xfc   :  { %v449_v28 = vpop.f32.mrf.mxu0  ;;  %v607_v29 = vpop.f32.mrf.mxu1 }
  0xfd   :  { %v460_v57 = vadd.f32 %v449_v28, %v312_v50  ;;  %v617_v61 = vadd.f32 %v603_v27, %v459_v48  ;;  %v1481_v27 = vmov 0.0   ;;  %v1479_v50 = vld [vmem:[%s1863_s6] sm:$0x1f]  }
  0xfe   :  { %v451_v30 = vpop.f32.mrf.mxu0  ;;  %v609_v32 = vpop.f32.mrf.mxu1  ;;  %1348 = vmatprep.subr.bf16.mxu1 %v1481_v27 }
  0xff   :  { %v461_v62 = vadd.f32 %v451_v30, %v314_v53  ;;  %v618_v5 = vadd.f32 %v607_v29, %v460_v57 }
 0x100   :  { %v453_v33 = vpop.f32.mrf.mxu0  ;;  %v611_v31 = vpop.f32.mrf.mxu1 }
 0x101   :  { %v619_v8 = vadd.f32 %v609_v32, %v461_v62 }
 0x102   :  { %v454_v34 = vpop.f32.mrf.mxu0  ;;  %v612_v35 = vpop.f32.mrf.mxu1 }
 0x10c   :  { %v741_v46 = vpop.f32.mrf.mxu0 }
 0x10d   :  { %v758_v58 = vadd.f32 %v741_v46, %v614_v51 }
 0x10e   :  { %v743_v52 = vpop.f32.mrf.mxu0 }
 0x10f   :  { %v759_v55 = vadd.f32 %v743_v52, %v615_v24  ;;  %v776_v6 = vadd.f32 %v769_v59, %v758_v58 }
 0x110   :  { %v745_v60 = vpop.f32.mrf.mxu0 }
 0x111   :  { %v760_v63 = vadd.f32 %v745_v60, %v616_v54  ;;  %v777_v1 = vadd.f32 %v773_v56, %v759_v55  ;;  %v782_v15 = vmax.f32 %v776_v6, 0.0 }
 0x112   :  { %v747_v0 = vpop.f32.mrf.mxu0 }
 0x113   :  { %v778_v3 = vadd.f32 %v769_v59, %v760_v63  ;;  %v761_v4 = vadd.f32 %v747_v0, %v617_v61  ;;  %v783_v2 = vmax.f32 %v777_v1, 0.0 }
 0x114   :  { %v751_v7 = vpop.f32.mrf.mxu0 }
 0x115   :  { %v779_v9 = vadd.f32 %v773_v56, %v761_v4  ;;  %v784_v10 = vmax.f32 %v778_v3, 0.0  ;;  %v762_v11 = vadd.f32 %v751_v7, %v618_v5 }
 0x116   :  { %v753_v12 = vpop.f32.mrf.mxu0 }
 0x117   :  { %v785_v13 = vmax.f32 %v779_v9, 0.0  ;;  %v763_v14 = vadd.f32 %v753_v12, %v619_v8  ;;  %v788_v19 = vpack.c.bf16 %v784_v10, %v782_v15  ;;  %v780_v20 = vadd.f32 %v769_v59, %v762_v11 }
 0x118   :  { %v755_v16 = vpop.f32.mrf.mxu0 }
 0x119   :  { %v789_v17 = vpack.c.bf16 %v785_v13, %v783_v2  ;;  %v781_v18 = vadd.f32 %v773_v56, %v763_v14  ;;  %v786_v25 = vmax.f32 %v780_v20, 0.0 }
 0x11a   :  { %v756_v21 = vpop.f32.mrf.mxu0 }
 0x11b   :  { %v787_v22 = vmax.f32 %v781_v18, 0.0  ;;  %1320 = vmatprep.mubr.msk.bf16.mxu1 %vm872_vm6, %v789_v17  ;;  %1332 = vmatprep.mubr.msk.bf16.mxu0 %vm872_vm6, %v789_v17  ;;  %v790_v26 = vpack.c.bf16 %v786_v25, %v786_v25 }
 0x11c   :  { %912 = vmatmul.mubr.bf16.vlgmr.msra.gmra.mxu1 %v788_v19  ;;  %1040 = vmatmul.mubr.bf16.vlgmr.msra.gmra.mxu0 %v788_v19 }
 0x11d   :  { %v791_v23 = vpack.c.bf16 %v787_v22, %v787_v22 }
 0x11f   :  { %1321 = vmatprep.mubr.msk.bf16.mxu1 %vm872_vm6, %v791_v23  ;;  %1333 = vmatprep.mubr.msk.bf16.mxu0 %vm872_vm6, %v791_v23 }
 0x124   :  { %920 = vmatmul.mubr.bf16.gmra.mxu1 %v790_v26  ;;  %1048 = vmatmul.mubr.bf16.gmra.mxu0 %v790_v26 }
 0x125   :  { %1352 = vmatprep.mubr.msk.bf16.mxu1 %vm1482_vm7, %v1481_v27 }
 0x1dc   :  { %v913_v28 = vpop.f32.mrf.mxu1  ;;  %v1041_v29 = vpop.f32.mrf.mxu0 }
 0x1dd   :  { %v1055_v46 = vmax.f32 %v913_v28, %v1041_v29 }
 0x1de   :  { %v915_v30 = vpop.f32.mrf.mxu1  ;;  %v1043_v32 = vpop.f32.mrf.mxu0 }
 0x1e0   :  { %v916_v33 = vpop.f32.mrf.mxu1  ;;  %v1044_v31 = vpop.f32.mrf.mxu0 }
 0x1e1   :  { %v1056_v42 = vmax.f32 %v916_v33, %v1044_v31 }
 0x1e2   :  { %v918_v34 = vpop.f32.mrf.mxu1  ;;  %v1046_v35 = vpop.f32.mrf.mxu0 }
 0x1e3   :  { %v1058_v48 = vpack.c.bf16 %v1056_v42, %v1055_v46 }
 0x1e4   :  { %v921_v36 = vpop.f32.mrf.mxu1  ;;  %v1049_v37 = vpop.f32.mrf.mxu0 }
 0x1e5   :  { %v1057_v38 = vmax.f32 %v921_v36, %v1049_v37 }
 0x1e6   :  { %v923_v39 = vpop.f32.mrf.mxu1  ;;  %v1051_v40 = vpop.f32.mrf.mxu0 }
 0x1e7   :  { %v1059_v41 = vpack.c.bf16 %v1057_v38, %v1057_v38 }
 0x1e8   :  { %v924_v43 = vpop.f32.mrf.mxu1  ;;  %v1052_v44 = vpop.f32.mrf.mxu0 }
 0x1e9   :  { %v1073_v45 = vsel %vm1071_vm8, %v1059_v41, 0 }
 0x1ea   :  { %v925_v47 = vpop.f32.mrf.mxu1  ;;  %v1053_v24 = vpop.f32.mrf.mxu0  ;;  %1349 = vmatpush3.bf16.msra.mxu1 %v1073_v45 }
 0x1eb   :  { %1350 = vmatprep.subr.bf16.mxu1 %v1481_v27 }
 0x1ee   :  { %1351 = vmatpush3.bf16.msra.mxu1 %v1058_v48 }
 0x1ef   :  { %1356 = vmatprep.subr.bf16.mxu1 %v1481_v27 }
 0x1f1   :  { %1353 = vmatmul.mubr.msk.bf16.vlgmr.msra.gmra.mxu1 %vm1067_vm9, %v1478_v49 }
 0x1f2   :  { %1357 = vmatpush3.bf16.msra.mxu1 %v1073_v45  ;;  %1360 = vmatprep.mubr.msk.bf16.mxu1 %vm1482_vm7, %v1481_v27 }
 0x1f3   :  { %1358 = vmatprep.subr.bf16.mxu1 %v1481_v27 }
 0x1f6   :  { %1359 = vmatpush3.bf16.msra.mxu1 %v1058_v48 }
 0x1f9   :  { %1361 = vmatmul.mubr.msk.bf16.vlgmr.msra.gmra.mxu1 %vm1067_vm9, %v1479_v50 }
 0x2b1   :  { %v1109_v51 = vpop.f32.mrf.mxu1 }
 0x2b3   :  { %v1354_v52 = vpop.f32.mrf.mxu1 }
 0x2b5   :  { %v1112_v53 = vpop.f32.mrf.mxu1 }
 0x2b7   :  { %v1355_v54 = vpop.f32.mrf.mxu1 }
 0x2b9   :  { %v1160_v55 = vpop.f32.mrf.mxu1 }
 0x2ba   :  { %v1167_v56 = vmax.f32 %v1109_v51, %v1160_v55 }
 0x2bb   :  { %v1362_v57 = vpop.f32.mrf.mxu1 }
 0x2bc   :  { %v1340_v58 = vpack.c.bf16 %v1167_v56, %v1167_v56 }
 0x2bd   :  { %v1163_v59 = vpop.f32.mrf.mxu1 }
 0x2be   :  { %1178 = vst.msk [vmem:[%s1864_s7] sm:$0xf] %vm1177_vm10, %v1340_v58  ;;  %v1168_v60 = vmax.f32 %v1112_v53, %v1163_v59 }
 0x2bf   :  { %v1363_v61 = vpop.f32.mrf.mxu1 }
 0x2c0   :  { %v1341_v62 = vpack.c.bf16 %v1168_v60, %v1168_v60 }
 0x2c2   :  { %1180 = vst.msk [vmem:[%s1864_s7 + $0x4] sm:$0x1] %vm1179_vm11, %v1341_v62 }

// kernel: net_forward.5
= control target key start
LH: loop header
LB: loop body
LE: loop exit
PB: predicated region body
PF: predicated region fallthrough
CT: control target
= control target key end

     0   :  { %v768_v1 = vmov 0   ;;  %v98_v20 = vlaneseq  ;;  %v769_v25 = vmov 1966171168   ;;  %vm421_vm0 = vcmask 1043456   ;;  %s970_s0 = inlined_call_operand.vmem [shape: bf16[2,400], index: 0, kind: input, shape index: {}]   ;;  %s971_s1 = inlined_call_operand.vmem [shape: bf16[400,120], index: 1, kind: input, shape index: {}]   ;;  %s972_s2 = inlined_call_operand.vmem [shape: f32[1,120], index: 2, kind: input, shape index: {}]   ;;  %s973_s3 = inlined_call_operand.vmem [shape: bf16[120,84], index: 3, kind: input, shape index: {}]   ;;  %s974_s4 = inlined_call_operand.vmem [shape: f32[1,84], index: 4, kind: input, shape index: {}]   ;;  %s975_s5 = inlined_call_operand.vmem [shape: bf16[84,2], index: 5, kind: input, shape index: {}]   ;;  %s976_s6 = inlined_call_operand.vmem [shape: f32[1,2], index: 6, kind: input, shape index: {}]   ;;  %s977_s7 = inlined_call_operand.hbm [shape: f32[2,2], index: 7, kind: output, shape index: {}]  }
   0x1   :  { %v707_v0 = vld [vmem:[%s971_s1 + $0x78] sm:$0xff]   ;;  %308 = vmatprep.subr.bf16.mxu1 %v768_v1  ;;  %v710_v4 = vld [vmem:[%s971_s1 + $0x70] sm:$0xff]   ;;  %v713_v7 = vld [vmem:[%s971_s1 + $0x68] sm:$0xff]   ;;  %v96_v26 = vunpack.c.l.s4 %v769_v25  ;;  %vm264_vm1 = vcmask 130048   ;;  %v770_v39 = vmov 0.0  }
   0x2   :  { %v708_v2 = vld [vmem:[%s971_s1 + $0xb8] sm:$0xff]   ;;  %628 = vmatprep.subr.bf16.mxu0 %v707_v0  ;;  %v711_v5 = vld [vmem:[%s971_s1 + $0xb0] sm:$0xff]   ;;  %v714_v8 = vld [vmem:[%s971_s1 + $0xa8] sm:$0xff]   ;;  %v99_v27 = vshrl.u32 %v98_v20, 7 }
   0x3   :  { %v709_v3 = vld [vmem:[%s971_s1 + $0x38] sm:$0xff]   ;;  %309 = vmatpush1.bf16.msra.mxu1 %v708_v2  ;;  %v712_v6 = vld [vmem:[%s971_s1 + $0x30] sm:$0xff]   ;;  %v715_v9 = vld [vmem:[%s971_s1 + $0x28] sm:$0xff]   ;;  %v97_v31 = vunpack.c.0.s8 %v96_v26 }
   0x4   :  { %629 = vmatpush3.bf16.msra.mxu0 %v709_v3  ;;  %310 = vmatprep.subr.bf16.mxu1 %v768_v1  ;;  %v716_v10 = vld [vmem:[%s971_s1 + $0x60] sm:$0xff]   ;;  %v719_v13 = vld [vmem:[%s971_s1 + $0x58] sm:$0xff]   ;;  %v722_v16 = vld [vmem:[%s971_s1 + $0x50] sm:$0xff]  }
   0x5   :  { %630 = vmatprep.subr.bf16.mxu0 %v710_v4  ;;  %v717_v11 = vld [vmem:[%s971_s1 + $0xa0] sm:$0xff]   ;;  %v720_v14 = vld [vmem:[%s971_s1 + $0x98] sm:$0xff]   ;;  %v723_v17 = vld [vmem:[%s971_s1 + $0x90] sm:$0xff]   ;;  %v100_v33 = vsub.s32 %v97_v31, %v99_v27 }
   0x6   :  { %v718_v12 = vld [vmem:[%s971_s1 + $0x20] sm:$0xff]   ;;  %v721_v15 = vld [vmem:[%s971_s1 + $0x18] sm:$0xff]   ;;  %v724_v18 = vld [vmem:[%s971_s1 + $0x10] sm:$0xff]  }
   0x7   :  { %311 = vmatpush1.bf16.msra.mxu1 %v711_v5  ;;  %v725_v19 = vld [vmem:[%s971_s1 + $0x48] sm:$0xff]   ;;  %v583_v23 = vld.sshfl [vmem:[%s970_s0] sm:$0x33 pattern:$0x75316420]  ;;  %v733_v41 = vld [vmem:[%s973_s3 + $0x30] sm:$0xff]  }
   0x8   :  { %631 = vmatpush3.bf16.msra.mxu0 %v712_v6  ;;  %312 = vmatprep.subr.bf16.mxu1 %v768_v1  ;;  %v726_v21 = vld [vmem:[%s971_s1 + $0x88] sm:$0xff]   ;;  %v728_v24 = vld [vmem:[%s971_s1 + $0x40] sm:$0xff]   ;;  %v732_v28 = vld [vmem:[%s973_s3 + $0x38] ss:$0 sps:$4 sm:$0xff]   ;;  %v94_v30 = vcombine.high %v583_v23, %v583_v23  ;;  %v101_v37 = vrot.slane %v583_v23, %v100_v33 }
   0x9   :  { %632 = vmatprep.subr.bf16.mxu0 %v713_v7  ;;  %v727_v22 = vld [vmem:[%s971_s1 + $0x8] sm:$0xff]   ;;  %v729_v29 = vld [vmem:[%s971_s1 + $0x80] sm:$0xff]   ;;  %v423_v35 = vsel %vm421_vm0, %v732_v28, 0 }
   0xa   :  { %v730_v32 = vld [vmem:[%s971_s1] sm:$0xff]   ;;  %v108_v36 = vrot.slane %v94_v30, %v100_v33  ;;  %v109_v40 = vcombine.high %v101_v37, %v101_v37 }
   0xb   :  { %313 = vmatpush1.bf16.msra.mxu1 %v714_v8  ;;  %v731_v34 = vld [vmem:[%s971_s1 + $0xc0] sm:$0xff]  }
   0xc   :  { %633 = vmatpush3.bf16.msra.mxu0 %v715_v9  ;;  %314 = vmatprep.subr.bf16.mxu1 %v768_v1  ;;  %v110_v38 = vcombine.high %v108_v36, %v108_v36 }
   0xd   :  { %634 = vmatprep.subr.bf16.mxu0 %v716_v10  ;;  %300 = vmatprep.mubr.bf16.mxu0 %v108_v36 }
   0xe   :  { %609 = vmatprep.mubr.msk.bf16.mxu1 %vm264_vm1, %v110_v38 }
   0xf   :  { %315 = vmatpush1.bf16.msra.mxu1 %v717_v11 }
  0x10   :  { %635 = vmatpush3.bf16.msra.mxu0 %v718_v12  ;;  %316 = vmatprep.subr.bf16.mxu1 %v768_v1 }
  0x11   :  { %636 = vmatprep.subr.bf16.mxu0 %v719_v13 }
  0x13   :  { %317 = vmatpush1.bf16.msra.mxu1 %v720_v14 }
  0x14   :  { %637 = vmatpush3.bf16.msra.mxu0 %v721_v15  ;;  %318 = vmatprep.subr.bf16.mxu1 %v768_v1 }
  0x15   :  { %638 = vmatprep.subr.bf16.mxu0 %v722_v16 }
  0x17   :  { %319 = vmatpush1.bf16.msra.mxu1 %v723_v17 }
  0x18   :  { %639 = vmatpush3.bf16.msra.mxu0 %v724_v18  ;;  %320 = vmatprep.subr.bf16.mxu1 %v768_v1 }
  0x19   :  { %640 = vmatprep.subr.bf16.mxu0 %v725_v19 }
  0x1b   :  { %321 = vmatpush1.bf16.msra.mxu1 %v726_v21 }
  0x1c   :  { %641 = vmatpush3.bf16.msra.mxu0 %v727_v22  ;;  %322 = vmatprep.subr.bf16.mxu1 %v768_v1 }
  0x1d   :  { %642 = vmatprep.subr.bf16.mxu0 %v728_v24 }
  0x1f   :  { %323 = vmatpush1.bf16.msra.mxu1 %v729_v29 }
  0x20   :  { %643 = vmatpush3.bf16.msra.mxu0 %v730_v32  ;;  %338 = vmatprep.subr.bf16.mxu1 %v768_v1 }
  0x21   :  { %666 = vmatprep.subr.bf16.mxu0 %v770_v39 }
  0x23   :  { %301 = vmatmul.mubr.bf16.vlgmr.msra.gmra.mxu0 %v101_v37  ;;  %339 = vmatpush2.bf16.msra.mxu1 %v731_v34 }
  0x24   :  { %667 = vmatpush3.bf16.msra.mxu0 %v423_v35 }
  0x25   :  { %12 = vsyncpa [#allocation3], 0  ;;  %668 = vmatprep.subr.bf16.mxu0 %v770_v39  ;;  %686 = vmatprep.subr.bf16.mxu1 %v770_v39  ;;  %v734_v42 = vld [vmem:[%s973_s3 + $0x28] sm:$0xff]   ;;  %v735_v43 = vld [vmem:[%s973_s3 + $0x20] sm:$0xff]   ;;  %vm771_vm2 = vmmov 0   ;;  %vm522_vm3 = vcmask 1041408  }
  0x26   :  { %341 = vmatmul.mubr.bf16.vlgmr.msra.gmra.mxu1 %v109_v40  ;;  %v736_v44 = vld [vmem:[%s973_s3 + $0x18] sm:$0xff]   ;;  %v737_v45 = vld [vmem:[%s973_s3 + $0x10] sm:$0xff]   ;;  %v738_v46 = vld [vmem:[%s973_s3 + $0x8] sm:$0xff]   ;;  %682 = vmatprep.mubr.msk.bf16.mxu0 %vm771_vm2, %v770_v39  ;;  %vm417_vm4 = vcmask 982016   ;;  %vm518_vm5 = vcmask 687104   ;;  %s772_s12 = smov [#allocation2]  }
  0x27   :  { %v739_v47 = vld [vmem:[%s973_s3] sm:$0xff]   ;;  %698 = vmatprep.mubr.msk.bf16.mxu1 %vm771_vm2, %v770_v39  ;;  %v740_v48 = vld [vmem:[%s975_s5 + $0x28] ss:$0 sps:$4 sm:$0x33]   ;;  %v742_v51 = vld [vmem:[%s975_s5 + $0x18] sm:$0xff]   ;;  %vm566_vm6 = vcmask 9216  }
  0x28   :  { %669 = vmatpush3.bf16.msra.mxu0 %v733_v41  ;;  %v524_v49 = vsel %vm522_vm3, %v740_v48, 0  ;;  %v741_v50 = vld [vmem:[%s975_s5 + $0x20] sm:$0xff]   ;;  %v743_v52 = vld [vmem:[%s975_s5 + $0x10] sm:$0xff]   ;;  %v744_v3 = vld [vmem:[%s975_s5 + $0x8] sm:$0xff]  }
  0x29   :  { %670 = vmatprep.subr.bf16.mxu0 %v770_v39  ;;  %687 = vmatpush3.bf16.msra.mxu1 %v524_v49  ;;  %v582_v55 = vld [vmem:[%s972_s2] ss:$0 sm:$0xff] }
  0x2a   :  { %688 = vmatprep.subr.bf16.mxu1 %v770_v39  ;;  %v745_v4 = vld [vmem:[%s975_s5] sm:$0xff]   ;;  %s574_s5 = sshll.u32 %s772_s12, 4  ;;  %s575_s5 = int_to_ptr.vmem [resolvable:$true] %s574_s5 }
  0x2b   :  { %v610_v5 = vld [vmem:[%s974_s4] ss:$0 sm:$0xff]  ;;  %s746_s4 = scalar_lea.vmem %s575_s5, 32  ;;  %p751_p1 = scmp.lt.s32.totalorder %s575_s5, %s575_s5 }
  0x2c   :  { %671 = vmatpush3.bf16.msra.mxu0 %v734_v42  ;;  %v620_v13 = vld [vmem:[%s976_s6] ss:$0 sm:$0xff]  ;;  %p747_p0 = scmp.ne.s32.totalorder %s575_s5, %s746_s4  ;;  %p752_p2 = scmp.lt.s32.totalorder %s746_s4, %s746_s4 }
  0x2d   :  { %672 = vmatprep.subr.bf16.mxu0 %v770_v39  ;;  %689 = vmatpush3.bf16.msra.mxu1 %v741_v50 }
  0x2e   :  { %690 = vmatprep.subr.bf16.mxu1 %v770_v39  ;;  %p753_p3 = por %p752_p2, %p751_p1 }
  0x30   :  { %673 = vmatpush3.bf16.msra.mxu0 %v735_v43  ;;  %p754_p4 = pnand %p753_p3, %p747_p0 }
  0x31   :  { %674 = vmatprep.subr.bf16.mxu0 %v770_v39  ;;  %691 = vmatpush3.bf16.msra.mxu1 %v742_v51 }
  0x32   :  { %692 = vmatprep.subr.bf16.mxu1 %v770_v39 }
  0x34   :  { %675 = vmatpush3.bf16.msra.mxu0 %v736_v44 }
  0x35   :  { %676 = vmatprep.subr.bf16.mxu0 %v770_v39  ;;  %693 = vmatpush3.bf16.msra.mxu1 %v743_v52 }
  0x36   :  { %694 = vmatprep.subr.bf16.mxu1 %v770_v39 }
  0x38   :  { %677 = vmatpush3.bf16.msra.mxu0 %v737_v45 }
  0x39   :  { %678 = vmatprep.subr.bf16.mxu0 %v770_v39  ;;  %695 = vmatpush3.bf16.msra.mxu1 %v744_v3 }
  0x3a   :  { %696 = vmatprep.subr.bf16.mxu1 %v770_v39 }
  0x3c   :  { %679 = vmatpush3.bf16.msra.mxu0 %v738_v46 }
  0x3d   :  { %680 = vmatprep.subr.bf16.mxu0 %v770_v39  ;;  %697 = vmatpush3.bf16.msra.mxu1 %v745_v4 }
  0x40   :  { %681 = vmatpush3.bf16.msra.mxu0 %v739_v47 }
  0xe3   :  { %v644_v53 = vpop.f32.mrf.mxu0 }
  0xe5   :  { %v645_v54 = vpop.f32.mrf.mxu0 }
  0xe6   :  { %v646_v56 = vadd.f32 %v645_v54, %v644_v53  ;;  %v342_v57 = vpop.f32.mrf.mxu1 }
  0xe7   :  { %v647_v58 = vpop.f32.mrf.mxu0 }
  0xe8   :  { %v303_v59 = vadd.f32 %v646_v56, %v582_v55  ;;  %v344_v60 = vpop.f32.mrf.mxu1 }
  0xe9   :  { %v648_v61 = vpop.f32.mrf.mxu0 }
  0xea   :  { %v343_v62 = vadd.f32 %v342_v57, %v303_v59  ;;  %v345_v63 = vpop.f32.mrf.mxu1 }
  0xec   :  { %v348_v0 = vmax.f32 %v343_v62, 0.0  ;;  %v346_v1 = vpop.f32.mrf.mxu1 }
  0xee   :  { %v349_v2 = vpack.c.bf16 %v348_v0, %v348_v0 }
  0xf0   :  { %683 = vmatmul.mubr.msk.bf16.vlgmr.msra.gmra.mxu0 %vm417_vm4, %v349_v2 }
 0x1b0   :  { %v459_v6 = vpop.f32.mrf.mxu0 }
 0x1b1   :  { %v460_v7 = vadd.f32 %v610_v5, %v459_v6 }
 0x1b2   :  { %v684_v8 = vpop.f32.mrf.mxu0 }
 0x1b3   :  { %v465_v9 = vmax.f32 %v460_v7, 0.0 }
 0x1b4   :  { %v462_v10 = vpop.f32.mrf.mxu0 }
 0x1b5   :  { %v466_v11 = vpack.c.bf16 %v465_v9, %v465_v9 }
 0x1b6   :  { %v685_v12 = vpop.f32.mrf.mxu0 }
 0x1b7   :  { %699 = vmatmul.mubr.msk.bf16.vlgmr.msra.gmra.mxu1 %vm518_vm5, %v466_v11 }
 0x277   :  { %v560_v14 = vpop.f32.mrf.mxu1 }
 0x278   :  { %v561_v15 = vadd.f32 %v620_v13, %v560_v14 }
 0x279   :  { %v700_v16 = vpop.f32.mrf.mxu1 }
 0x27a   :  { %567 = vst.msk [vmem:[#allocation2] sm:$0x3] %vm566_vm6, %v561_v15 }
 0x27b   :  { %v563_v17 = vpop.f32.mrf.mxu1 }
 0x27c   :  { %757 = shalt.err (!%p754_p4)
}
 0x27d   :  { %577 = dma.vmem_to_hbm [thread:$0]  %s575_s5, 32, %s977_s7, [#allocation3]   ;;  %v701_v18 = vpop.f32.mrf.mxu1 }
 0x27e   :  { %766 = dma.done.wait [#allocation3], 32  }
 0x27f   :  { %767 = vsyncadd [#allocation3], 4294967264 }
 0x280   :  { %581 = vsyncpa [#allocation3], 1 }

</bundles_post_ra>
